<compile_context>
chip_gen: v6e
topology: v6e:2x2x1
jax: 0.10.0
libtpu: 0.0.40
codegen_flags: <defaults>
</compile_context>

<pallas_src>
import functools

import jax
import jax.numpy as jnp
from jax.experimental import pallas as pl
from jax.experimental.pallas import tpu as pltpu

EPS = 1e-5
CPAD = 128  # lane-dense channel slab width

_CPARAMS = pltpu.CompilerParams(
    dimension_semantics=("parallel",),
    vmem_limit_bytes=32 * 1024 * 1024,
)


def _pair(v):
    return (v, v) if isinstance(v, int) else tuple(v)


# ----------------------------- Pallas kernels ------------------------------ #

def _conv_pair_kernel(x_ref, w_ref, y_ref, psum_ref, psq_ref,
                      *, kh, kw, sh, sw, oh, ow):
    """Fused conv1+shortcut conv: sum of KH*KW shifted matmuls over one sample.

    x_ref : (1, Hp, Wp, Cin) padded NHWC tile
    w_ref : (KH*KW, Cin, 128) per-tap weights (conv1 cols [0,C), shortcut [C,2C))
    y_ref : (1, OH*OW, 128) raw (pre-BN) conv outputs
    psum/psq : (1, 1, 128) per-block channel sum / sum-of-squares
    """
    x = x_ref[0]                                  # (Hp, Wp, Cin)
    cin = x.shape[-1]
    acc = None
    t = 0
    for i in range(kh):
        for j in range(kw):
            xs = jax.lax.slice(
                x,
                (i, j, 0),
                (i + (oh - 1) * sh + 1, j + (ow - 1) * sw + 1, cin),
                (sh, sw, 1),
            )
            xs = xs.reshape(oh * ow, cin)
            contrib = jnp.dot(xs, w_ref[t], preferred_element_type=jnp.float32)
            acc = contrib if acc is None else acc + contrib
            t += 1
    y_ref[0] = acc
    psum_ref[0] = jnp.sum(acc, axis=0, keepdims=True)
    psq_ref[0] = jnp.sum(acc * acc, axis=0, keepdims=True)


def _conv2_kernel(ya_ref, w_ref, sc_ref, sh_ref, y_ref, psum_ref, psq_ref,
                  *, kh, ph, oh, ow):
    """BN(conv1)+ReLU applied on the fly, then layer2's (kh,1) conv as kh shifted matmuls.

    ya_ref : (1, OH*OW, 128) raw stage-A output
    w_ref  : (kh, 128, 128) layer2 tap weights (input rows [0,C) -> output cols [C,2C))
    sc/sh  : (1, 128) folded BN1 scale/shift (zero outside cols [0,C))
    """
    ya = ya_ref[0]                                # (OH*OW, 128)
    h1 = jnp.maximum(ya * sc_ref[...] + sh_ref[...], 0.0)
    zrow = jnp.zeros((ph * ow, CPAD), jnp.float32)
    hp = jnp.concatenate([zrow, h1, zrow], axis=0)  # H-pad after ReLU (true zeros)
    acc = None
    for i in range(kh):
        contrib = jnp.dot(hp[i * ow:i * ow + oh * ow, :], w_ref[i],
                          preferred_element_type=jnp.float32)
        acc = contrib if acc is None else acc + contrib
    y_ref[0] = acc
    psum_ref[0] = jnp.sum(acc, axis=0, keepdims=True)
    psq_ref[0] = jnp.sum(acc * acc, axis=0, keepdims=True)


def _bn_add_relu_kernel(y2_ref, ya_ref, s2_ref, sid_ref, shc_ref, o_ref):
    """out = relu(BN2(conv2) + BN_sc(shortcut conv)); everything column-aligned."""
    o_ref[0] = jnp.maximum(
        y2_ref[0] * s2_ref[...] + ya_ref[0] * sid_ref[...] + shc_ref[...], 0.0)


# ------------------------------ JAX glue ----------------------------------- #

def _bn_fold(s, ss, count, gamma, beta):
    """Fold batch stats into per-channel affine (scale, shift), each (1, 128)."""
    mean = s / count
    var = jnp.maximum(ss / count - mean * mean, 0.0)
    scale = gamma * jax.lax.rsqrt(var + EPS)
    shift = beta - mean * scale
    return scale.reshape(1, CPAD), shift.reshape(1, CPAD)


def _stage_a(x_pad, w_a, n, oh, ow, kh, kw, sh, sw):
    hp_, wp_, cin = x_pad.shape[1:]
    kern = functools.partial(_conv_pair_kernel,
                             kh=kh, kw=kw, sh=sh, sw=sw, oh=oh, ow=ow)
    y, ps, pq = pl.pallas_call(
        kern,
        grid=(n,),
        in_specs=[
            pl.BlockSpec((1, hp_, wp_, cin), lambda b: (b, 0, 0, 0)),
            pl.BlockSpec((kh * kw, cin, CPAD), lambda b: (0, 0, 0)),
        ],
        out_specs=[
            pl.BlockSpec((1, oh * ow, CPAD), lambda b: (b, 0, 0)),
            pl.BlockSpec((1, 1, CPAD), lambda b: (b, 0, 0)),
            pl.BlockSpec((1, 1, CPAD), lambda b: (b, 0, 0)),
        ],
        out_shape=[
            jax.ShapeDtypeStruct((n, oh * ow, CPAD), jnp.float32),
            jax.ShapeDtypeStruct((n, 1, CPAD), jnp.float32),
            jax.ShapeDtypeStruct((n, 1, CPAD), jnp.float32),
        ],
        compiler_params=_CPARAMS,
    )(x_pad, w_a)
    return y, jnp.sum(ps, axis=(0, 1)), jnp.sum(pq, axis=(0, 1))


def _stage_b(y_a, w2m, scale1, shift1, n, oh, ow, kh2, ph2):
    kern = functools.partial(_conv2_kernel, kh=kh2, ph=ph2, oh=oh, ow=ow)
    y2, ps, pq = pl.pallas_call(
        kern,
        grid=(n,),
        in_specs=[
            pl.BlockSpec((1, oh * ow, CPAD), lambda b: (b, 0, 0)),
            pl.BlockSpec((kh2, CPAD, CPAD), lambda b: (0, 0, 0)),
            pl.BlockSpec((1, CPAD), lambda b: (0, 0)),
            pl.BlockSpec((1, CPAD), lambda b: (0, 0)),
        ],
        out_specs=[
            pl.BlockSpec((1, oh * ow, CPAD), lambda b: (b, 0, 0)),
            pl.BlockSpec((1, 1, CPAD), lambda b: (b, 0, 0)),
            pl.BlockSpec((1, 1, CPAD), lambda b: (b, 0, 0)),
        ],
        out_shape=[
            jax.ShapeDtypeStruct((n, oh * ow, CPAD), jnp.float32),
            jax.ShapeDtypeStruct((n, 1, CPAD), jnp.float32),
            jax.ShapeDtypeStruct((n, 1, CPAD), jnp.float32),
        ],
        compiler_params=_CPARAMS,
    )(y_a, w2m, scale1, shift1)
    return y2, jnp.sum(ps, axis=(0, 1)), jnp.sum(pq, axis=(0, 1))


def _stage_c(y2, y_a, scale2, scale_id, shift_c, n, oh, ow):
    return pl.pallas_call(
        _bn_add_relu_kernel,
        grid=(n,),
        in_specs=[
            pl.BlockSpec((1, oh * ow, CPAD), lambda b: (b, 0, 0)),
            pl.BlockSpec((1, oh * ow, CPAD), lambda b: (b, 0, 0)),
            pl.BlockSpec((1, CPAD), lambda b: (0, 0)),
            pl.BlockSpec((1, CPAD), lambda b: (0, 0)),
            pl.BlockSpec((1, CPAD), lambda b: (0, 0)),
        ],
        out_specs=pl.BlockSpec((1, oh * ow, CPAD), lambda b: (b, 0, 0)),
        out_shape=jax.ShapeDtypeStruct((n, oh * ow, CPAD), jnp.float32),
        compiler_params=_CPARAMS,
    )(y2, y_a, scale2, scale_id, shift_c)


def basic_block_forward(x_nchw, params):
    """Forward pass of BasicBlock. Input/output are NCHW like PyTorch."""
    c_out, c_in, kh, kw = params["w1"].shape
    sh, sw = _pair(params["stride"])
    ph, pw = _pair(params["padding"])
    n, _, h, w = x_nchw.shape
    oh = (h + 2 * ph - kh) // sh + 1
    ow = (w + 2 * pw - kw) // sw + 1

    # NCHW -> NHWC, pad spatially once (single 1x read of the activation).
    x = jnp.transpose(x_nchw, (0, 2, 3, 1)).astype(jnp.float32)
    x_pad = jnp.pad(x, ((0, 0), (ph, ph), (pw, pw), (0, 0)))

    # Fused stage-A weights: conv1 -> cols [0,C), shortcut -> cols [C,2C).
    w1 = jnp.transpose(params["w1"], (2, 3, 1, 0)).reshape(kh * kw, c_in, c_out)
    wsc = jnp.transpose(params["w_sc"], (2, 3, 1, 0)).reshape(kh * kw, c_in, c_out)
    w_a = jnp.zeros((kh * kw, c_in, CPAD), jnp.float32)
    w_a = w_a.at[:, :, 0:c_out].set(w1.astype(jnp.float32))
    w_a = w_a.at[:, :, c_out:2 * c_out].set(wsc.astype(jnp.float32))

    # layer2 conv (3,1), stride 1, padding (1,0): h1 cols [0,C) -> output cols [C,2C).
    kh2 = params["w2"].shape[2]
    ph2 = 1
    w2 = jnp.transpose(params["w2"], (2, 3, 1, 0)).reshape(kh2, c_out, c_out)
    w2m = jnp.zeros((kh2, CPAD, CPAD), jnp.float32)
    w2m = w2m.at[:, 0:c_out, c_out:2 * c_out].set(w2.astype(jnp.float32))

    count = float(n * oh * ow)

    def col_embed(v, lo):
        return jnp.zeros((CPAD,), jnp.float32).at[lo:lo + c_out].set(
            v.astype(jnp.float32))

    # Stage A: fused conv1 + shortcut conv, per-sample grid, partial BN stats.
    # (Conv biases are dropped: they cancel against the batch-mean subtraction.)
    y_a, sa, qa = _stage_a(x_pad, w_a, n, oh, ow, kh, kw, sh, sw)

    scale1, shift1 = _bn_fold(sa, qa, count, col_embed(params["g1"], 0),
                              col_embed(params["beta1"], 0))
    scale_id, shift_id = _bn_fold(sa, qa, count, col_embed(params["g_sc"], c_out),
                                  col_embed(params["beta_sc"], c_out))

    # Stage B: BN1+ReLU epilogue fused with layer2 conv; partial stats for BN2.
    y2, s2, q2 = _stage_b(y_a, w2m, scale1, shift1, n, oh, ow, kh2, ph2)

    scale2, shift2 = _bn_fold(s2, q2, count, col_embed(params["g2"], c_out),
                              col_embed(params["beta2"], c_out))
    shift_c = shift2 + shift_id

    # Stage C: BN2 + shortcut-BN + residual add + ReLU (all at cols [C,2C)).
    out = _stage_c(y2, y_a, scale2, scale_id, shift_c, n, oh, ow)

    out = out.reshape(n, oh, ow, CPAD)[:, :, :, c_out:2 * c_out]
    return jnp.transpose(out, (0, 3, 1, 2))  # NHWC -> NCHW


# ----------------------------- reference (check) --------------------------- #

def _ref_conv_bn(x_nhwc, w_oihw, bias, gamma, beta, stride, padding,
                 relu=False, residual=None):
    sh, sw = _pair(stride)
    ph, pw = _pair(padding)
    w_hwio = jnp.transpose(w_oihw, (2, 3, 1, 0))
    y = jax.lax.conv_general_dilated(
        x_nhwc, w_hwio, window_strides=(sh, sw),
        padding=[(ph, ph), (pw, pw)],
        dimension_numbers=("NHWC", "HWIO", "NHWC")) + bias
    mean = jnp.mean(y, axis=(0, 1, 2), keepdims=True)
    var = jnp.mean((y - mean) ** 2, axis=(0, 1, 2), keepdims=True)
    y = (y - mean) * jax.lax.rsqrt(var + EPS) * gamma + beta
    if residual is not None:
        y = jnp.maximum(y + residual, 0.0)
    elif relu:
        y = jnp.maximum(y, 0.0)
    return y


def _ref_forward(x_nchw, p):
    x = jnp.transpose(x_nchw, (0, 2, 3, 1))
    ident = _ref_conv_bn(x, p["w_sc"], p["b_sc"], p["g_sc"], p["beta_sc"],
                         p["stride"], p["padding"])
    h1 = _ref_conv_bn(x, p["w1"], p["b1"], p["g1"], p["beta1"],
                      p["stride"], p["padding"], relu=True)
    out = _ref_conv_bn(h1, p["w2"], p["b2"], p["g2"], p["beta2"],
                       1, (1, 0), residual=ident)
    return jnp.transpose(out, (0, 3, 1, 2))


# --------------------------------- main ------------------------------------ #

if __name__ == "__main__":
    key = jax.random.PRNGKey(0)
    in_ch, out_ch, ksize, stride, padding = 4, 8, 3, 1, 1
    N, H, W = 2, 16, 16

    k = jax.random.split(key, 7)
    params = {
        "stride": stride,
        "padding": padding,
        # layer1: Conv2d(in_ch, out_ch, 3, 1, 1) + BN
        "w1": 0.1 * jax.random.normal(k[0], (out_ch, in_ch, ksize, ksize), jnp.float32),
        "b1": 0.1 * jax.random.normal(k[1], (out_ch,), jnp.float32),
        "g1": jnp.ones((out_ch,), jnp.float32),
        "beta1": jnp.zeros((out_ch,), jnp.float32),
        # layer2: Conv2d(out_ch, out_ch, (3,1), 1, (1,0)) + BN
        "w2": 0.1 * jax.random.normal(k[2], (out_ch, out_ch, 3, 1), jnp.float32),
        "b2": 0.1 * jax.random.normal(k[3], (out_ch,), jnp.float32),
        "g2": jnp.ones((out_ch,), jnp.float32),
        "beta2": jnp.zeros((out_ch,), jnp.float32),
        # shortcut: Conv2d(in_ch, out_ch, 3, 1, 1) + BN
        "w_sc": 0.1 * jax.random.normal(k[4], (out_ch, in_ch, ksize, ksize), jnp.float32),
        "b_sc": 0.1 * jax.random.normal(k[5], (out_ch,), jnp.float32),
        "g_sc": jnp.ones((out_ch,), jnp.float32),
        "beta_sc": jnp.zeros((out_ch,), jnp.float32),
    }

    x = jax.random.normal(k[6], (N, in_ch, H, W), jnp.float32)

    out = jax.block_until_ready(basic_block_forward(x, params))
    ref = jax.block_until_ready(_ref_forward(x, params))

    assert out.shape == (N, out_ch, H, W), out.shape
    err = float(jnp.abs(out - ref).max())
    assert jnp.allclose(out, ref, atol=5e-4, rtol=5e-4), err

    print("KERNEL_OK")
</pallas_src>

<mosaic_0001>
module attributes {stable_mosaic.version = 11 : i64} {
  func.func @_conv_pair_kernel(%arg0: i32, %arg1: memref<1x18x18x4xf32, #tpu.memory_space<vmem>>, %arg2: memref<9x4x128xf32, #tpu.memory_space<vmem>>, %arg3: memref<1x256x128xf32, #tpu.memory_space<vmem>>, %arg4: memref<1x1x128xf32, #tpu.memory_space<vmem>>, %arg5: memref<1x1x128xf32, #tpu.memory_space<vmem>>) attributes {dimension_semantics = [#tpu.dimension_semantics<parallel>], iteration_bounds = array<i64: 2>, scalar_prefetch = 0 : i64, scratch_operands = 0 : i64, tpu.core_type = #tpu.core_type<tc>, window_params = [{transform_indices = @transform_0, window_bounds = array<i64: 1, 18, 18, 4>}, {pipeline_mode = #tpu.pipeline_mode<synchronous>, transform_indices = @transform_1, window_bounds = array<i64: 9, 4, 128>}, {transform_indices = @transform_2, window_bounds = array<i64: 1, 256, 128>}, {transform_indices = @transform_3, window_bounds = array<i64: 1, 1, 128>}, {transform_indices = @transform_4, window_bounds = array<i64: 1, 1, 128>}]} {
    %c0 = arith.constant 0 : index
    %c0_0 = arith.constant 0 : index
    %c0_1 = arith.constant 0 : index
    %c0_2 = arith.constant 0 : index
    %0 = vector.load %arg1[%c0, %c0_0, %c0_1, %c0_2] : memref<1x18x18x4xf32, #tpu.memory_space<vmem>>, vector<1x18x18x4xf32>
    %1 = vector.shape_cast %0 : vector<1x18x18x4xf32> to vector<18x18x4xf32>
    %2 = vector.extract_strided_slice %1 {offsets = [0, 0, 0], sizes = [16, 16, 4], strides = [1, 1, 1]} : vector<18x18x4xf32> to vector<16x16x4xf32>
    %3 = vector.shape_cast %2 : vector<16x16x4xf32> to vector<256x4xf32>
    %c0_3 = arith.constant 0 : index
    %c0_4 = arith.constant 0 : index
    %c0_5 = arith.constant 0 : index
    %4 = vector.load %arg2[%c0_3, %c0_4, %c0_5] : memref<9x4x128xf32, #tpu.memory_space<vmem>>, vector<1x4x128xf32>
    %5 = vector.shape_cast %4 : vector<1x4x128xf32> to vector<4x128xf32>
    %cst = arith.constant dense<0.000000e+00> : vector<256x128xf32>
    %6 = tpu.matmul %3, %5, %cst {dimension_numbers = #tpu.dot_dimension_numbers<[1], [0], [0], [1], [0, 0, 1, 1], [], []>} : vector<256x4xf32>, vector<4x128xf32>, vector<256x128xf32> -> vector<256x128xf32>
    %7 = vector.extract_strided_slice %1 {offsets = [0, 1, 0], sizes = [16, 16, 4], strides = [1, 1, 1]} : vector<18x18x4xf32> to vector<16x16x4xf32>
    %8 = vector.shape_cast %7 : vector<16x16x4xf32> to vector<256x4xf32>
    %c1 = arith.constant 1 : index
    %c0_6 = arith.constant 0 : index
    %c0_7 = arith.constant 0 : index
    %9 = vector.load %arg2[%c1, %c0_6, %c0_7] : memref<9x4x128xf32, #tpu.memory_space<vmem>>, vector<1x4x128xf32>
    %10 = vector.shape_cast %9 : vector<1x4x128xf32> to vector<4x128xf32>
    %cst_8 = arith.constant dense<0.000000e+00> : vector<256x128xf32>
    %11 = tpu.matmul %8, %10, %cst_8 {dimension_numbers = #tpu.dot_dimension_numbers<[1], [0], [0], [1], [0, 0, 1, 1], [], []>} : vector<256x4xf32>, vector<4x128xf32>, vector<256x128xf32> -> vector<256x128xf32>
    %12 = arith.addf %6, %11 : vector<256x128xf32>
    %13 = vector.extract_strided_slice %1 {offsets = [0, 2, 0], sizes = [16, 16, 4], strides = [1, 1, 1]} : vector<18x18x4xf32> to vector<16x16x4xf32>
    %14 = vector.shape_cast %13 : vector<16x16x4xf32> to vector<256x4xf32>
    %c2 = arith.constant 2 : index
    %c0_9 = arith.constant 0 : index
    %c0_10 = arith.constant 0 : index
    %15 = vector.load %arg2[%c2, %c0_9, %c0_10] : memref<9x4x128xf32, #tpu.memory_space<vmem>>, vector<1x4x128xf32>
    %16 = vector.shape_cast %15 : vector<1x4x128xf32> to vector<4x128xf32>
    %cst_11 = arith.constant dense<0.000000e+00> : vector<256x128xf32>
    %17 = tpu.matmul %14, %16, %cst_11 {dimension_numbers = #tpu.dot_dimension_numbers<[1], [0], [0], [1], [0, 0, 1, 1], [], []>} : vector<256x4xf32>, vector<4x128xf32>, vector<256x128xf32> -> vector<256x128xf32>
    %18 = arith.addf %12, %17 : vector<256x128xf32>
    %19 = vector.extract_strided_slice %1 {offsets = [1, 0, 0], sizes = [16, 16, 4], strides = [1, 1, 1]} : vector<18x18x4xf32> to vector<16x16x4xf32>
    %20 = vector.shape_cast %19 : vector<16x16x4xf32> to vector<256x4xf32>
    %c3 = arith.constant 3 : index
    %c0_12 = arith.constant 0 : index
    %c0_13 = arith.constant 0 : index
    %21 = vector.load %arg2[%c3, %c0_12, %c0_13] : memref<9x4x128xf32, #tpu.memory_space<vmem>>, vector<1x4x128xf32>
    %22 = vector.shape_cast %21 : vector<1x4x128xf32> to vector<4x128xf32>
    %cst_14 = arith.constant dense<0.000000e+00> : vector<256x128xf32>
    %23 = tpu.matmul %20, %22, %cst_14 {dimension_numbers = #tpu.dot_dimension_numbers<[1], [0], [0], [1], [0, 0, 1, 1], [], []>} : vector<256x4xf32>, vector<4x128xf32>, vector<256x128xf32> -> vector<256x128xf32>
    %24 = arith.addf %18, %23 : vector<256x128xf32>
    %25 = vector.extract_strided_slice %1 {offsets = [1, 1, 0], sizes = [16, 16, 4], strides = [1, 1, 1]} : vector<18x18x4xf32> to vector<16x16x4xf32>
    %26 = vector.shape_cast %25 : vector<16x16x4xf32> to vector<256x4xf32>
    %c4 = arith.constant 4 : index
    %c0_15 = arith.constant 0 : index
    %c0_16 = arith.constant 0 : index
    %27 = vector.load %arg2[%c4, %c0_15, %c0_16] : memref<9x4x128xf32, #tpu.memory_space<vmem>>, vector<1x4x128xf32>
    %28 = vector.shape_cast %27 : vector<1x4x128xf32> to vector<4x128xf32>
    %cst_17 = arith.constant dense<0.000000e+00> : vector<256x128xf32>
    %29 = tpu.matmul %26, %28, %cst_17 {dimension_numbers = #tpu.dot_dimension_numbers<[1], [0], [0], [1], [0, 0, 1, 1], [], []>} : vector<256x4xf32>, vector<4x128xf32>, vector<256x128xf32> -> vector<256x128xf32>
    %30 = arith.addf %24, %29 : vector<256x128xf32>
    %31 = vector.extract_strided_slice %1 {offsets = [1, 2, 0], sizes = [16, 16, 4], strides = [1, 1, 1]} : vector<18x18x4xf32> to vector<16x16x4xf32>
    %32 = vector.shape_cast %31 : vector<16x16x4xf32> to vector<256x4xf32>
    %c5 = arith.constant 5 : index
    %c0_18 = arith.constant 0 : index
    %c0_19 = arith.constant 0 : index
    %33 = vector.load %arg2[%c5, %c0_18, %c0_19] : memref<9x4x128xf32, #tpu.memory_space<vmem>>, vector<1x4x128xf32>
    %34 = vector.shape_cast %33 : vector<1x4x128xf32> to vector<4x128xf32>
    %cst_20 = arith.constant dense<0.000000e+00> : vector<256x128xf32>
    %35 = tpu.matmul %32, %34, %cst_20 {dimension_numbers = #tpu.dot_dimension_numbers<[1], [0], [0], [1], [0, 0, 1, 1], [], []>} : vector<256x4xf32>, vector<4x128xf32>, vector<256x128xf32> -> vector<256x128xf32>
    %36 = arith.addf %30, %35 : vector<256x128xf32>
    %37 = vector.extract_strided_slice %1 {offsets = [2, 0, 0], sizes = [16, 16, 4], strides = [1, 1, 1]} : vector<18x18x4xf32> to vector<16x16x4xf32>
    %38 = vector.shape_cast %37 : vector<16x16x4xf32> to vector<256x4xf32>
    %c6 = arith.constant 6 : index
    %c0_21 = arith.constant 0 : index
    %c0_22 = arith.constant 0 : index
    %39 = vector.load %arg2[%c6, %c0_21, %c0_22] : memref<9x4x128xf32, #tpu.memory_space<vmem>>, vector<1x4x128xf32>
    %40 = vector.shape_cast %39 : vector<1x4x128xf32> to vector<4x128xf32>
    %cst_23 = arith.constant dense<0.000000e+00> : vector<256x128xf32>
    %41 = tpu.matmul %38, %40, %cst_23 {dimension_numbers = #tpu.dot_dimension_numbers<[1], [0], [0], [1], [0, 0, 1, 1], [], []>} : vector<256x4xf32>, vector<4x128xf32>, vector<256x128xf32> -> vector<256x128xf32>
    %42 = arith.addf %36, %41 : vector<256x128xf32>
    %43 = vector.extract_strided_slice %1 {offsets = [2, 1, 0], sizes = [16, 16, 4], strides = [1, 1, 1]} : vector<18x18x4xf32> to vector<16x16x4xf32>
    %44 = vector.shape_cast %43 : vector<16x16x4xf32> to vector<256x4xf32>
    %c7 = arith.constant 7 : index
    %c0_24 = arith.constant 0 : index
    %c0_25 = arith.constant 0 : index
    %45 = vector.load %arg2[%c7, %c0_24, %c0_25] : memref<9x4x128xf32, #tpu.memory_space<vmem>>, vector<1x4x128xf32>
    %46 = vector.shape_cast %45 : vector<1x4x128xf32> to vector<4x128xf32>
    %cst_26 = arith.constant dense<0.000000e+00> : vector<256x128xf32>
    %47 = tpu.matmul %44, %46, %cst_26 {dimension_numbers = #tpu.dot_dimension_numbers<[1], [0], [0], [1], [0, 0, 1, 1], [], []>} : vector<256x4xf32>, vector<4x128xf32>, vector<256x128xf32> -> vector<256x128xf32>
    %48 = arith.addf %42, %47 : vector<256x128xf32>
    %49 = vector.extract_strided_slice %1 {offsets = [2, 2, 0], sizes = [16, 16, 4], strides = [1, 1, 1]} : vector<18x18x4xf32> to vector<16x16x4xf32>
    %50 = vector.shape_cast %49 : vector<16x16x4xf32> to vector<256x4xf32>
    %c8 = arith.constant 8 : index
    %c0_27 = arith.constant 0 : index
    %c0_28 = arith.constant 0 : index
    %51 = vector.load %arg2[%c8, %c0_27, %c0_28] : memref<9x4x128xf32, #tpu.memory_space<vmem>>, vector<1x4x128xf32>
    %52 = vector.shape_cast %51 : vector<1x4x128xf32> to vector<4x128xf32>
    %cst_29 = arith.constant dense<0.000000e+00> : vector<256x128xf32>
    %53 = tpu.matmul %50, %52, %cst_29 {dimension_numbers = #tpu.dot_dimension_numbers<[1], [0], [0], [1], [0, 0, 1, 1], [], []>} : vector<256x4xf32>, vector<4x128xf32>, vector<256x128xf32> -> vector<256x128xf32>
    %54 = arith.addf %48, %53 : vector<256x128xf32>
    %c0_30 = arith.constant 0 : index
    %c0_31 = arith.constant 0 : index
    %c0_32 = arith.constant 0 : index
    %55 = vector.load %arg3[%c0_30, %c0_31, %c0_32] : memref<1x256x128xf32, #tpu.memory_space<vmem>>, vector<1x256x128xf32>
    %56 = vector.shape_cast %55 : vector<1x256x128xf32> to vector<256x128xf32>
    %57 = vector.shape_cast %54 : vector<256x128xf32> to vector<1x256x128xf32>
    tpu.vector_store %arg3[%c0_30, %c0_31, %c0_32], %57 {strides = array<i32>} : memref<1x256x128xf32, #tpu.memory_space<vmem>>, vector<1x256x128xf32>,
    %cst_33 = arith.constant dense<0.000000e+00> : vector<128xf32>
    %58 = vector.multi_reduction <add>, %54, %cst_33 [0] : vector<256x128xf32> to vector<128xf32>
    %59 = vector.shape_cast %58 : vector<128xf32> to vector<1x128xf32>
    %c0_34 = arith.constant 0 : index
    %c0_35 = arith.constant 0 : index
    %c0_36 = arith.constant 0 : index
    %60 = vector.load %arg4[%c0_34, %c0_35, %c0_36] : memref<1x1x128xf32, #tpu.memory_space<vmem>>, vector<1x1x128xf32>
    %61 = vector.shape_cast %60 : vector<1x1x128xf32> to vector<1x128xf32>
    %62 = vector.shape_cast %59 : vector<1x128xf32> to vector<1x1x128xf32>
    tpu.vector_store %arg4[%c0_34, %c0_35, %c0_36], %62 {strides = array<i32>} : memref<1x1x128xf32, #tpu.memory_space<vmem>>, vector<1x1x128xf32>,
    %63 = arith.mulf %54, %54 : vector<256x128xf32>
    %cst_37 = arith.constant dense<0.000000e+00> : vector<128xf32>
    %64 = vector.multi_reduction <add>, %63, %cst_37 [0] : vector<256x128xf32> to vector<128xf32>
    %65 = vector.shape_cast %64 : vector<128xf32> to vector<1x128xf32>
    %c0_38 = arith.constant 0 : index
    %c0_39 = arith.constant 0 : index
    %c0_40 = arith.constant 0 : index
    %66 = vector.load %arg5[%c0_38, %c0_39, %c0_40] : memref<1x1x128xf32, #tpu.memory_space<vmem>>, vector<1x1x128xf32>
    %67 = vector.shape_cast %66 : vector<1x1x128xf32> to vector<1x128xf32>
    %68 = vector.shape_cast %65 : vector<1x128xf32> to vector<1x1x128xf32>
    tpu.vector_store %arg5[%c0_38, %c0_39, %c0_40], %68 {strides = array<i32>} : memref<1x1x128xf32, #tpu.memory_space<vmem>>, vector<1x1x128xf32>,
    return
  }
  func.func @transform_0(%arg0: i32) -> (i32, i32, i32, i32) {
    %c0_i32 = arith.constant 0 : i32
    %c0_i32_0 = arith.constant 0 : i32
    %c0_i32_1 = arith.constant 0 : i32
    %c0_i32_2 = arith.constant 0 : i32
    return %arg0, %c0_i32, %c0_i32_0, %c0_i32_1 : i32, i32, i32, i32
  }
  func.func @transform_1(%arg0: i32) -> (i32, i32, i32) {
    %c0_i32 = arith.constant 0 : i32
    %c0_i32_0 = arith.constant 0 : i32
    %c0_i32_1 = arith.constant 0 : i32
    %c0_i32_2 = arith.constant 0 : i32
    return %c0_i32, %c0_i32_0, %c0_i32_1 : i32, i32, i32
  }
  func.func @transform_2(%arg0: i32) -> (i32, i32, i32) {
    %c0_i32 = arith.constant 0 : i32
    %c0_i32_0 = arith.constant 0 : i32
    %c0_i32_1 = arith.constant 0 : i32
    return %arg0, %c0_i32, %c0_i32_0 : i32, i32, i32
  }
  func.func @transform_3(%arg0: i32) -> (i32, i32, i32) {
    %c0_i32 = arith.constant 0 : i32
    %c0_i32_0 = arith.constant 0 : i32
    %c0_i32_1 = arith.constant 0 : i32
    return %arg0, %c0_i32, %c0_i32_0 : i32, i32, i32
  }
  func.func @transform_4(%arg0: i32) -> (i32, i32, i32) {
    %c0_i32 = arith.constant 0 : i32
    %c0_i32_0 = arith.constant 0 : i32
    %c0_i32_1 = arith.constant 0 : i32
    return %arg0, %c0_i32, %c0_i32_0 : i32, i32, i32
  }
}

</mosaic_0001>

<bundles_post_ra>
// kernel: tpu_custom_call.1
= control target key start
LH: loop header
LB: loop body
LE: loop exit
PB: predicated region body
PF: predicated region fallthrough
CT: control target
= control target key end

     0   :  { %10 = vsyncpa [#allocation3], 0  ;;  %s6375_s0 = inlined_call_operand.vmem [shape: f32[2,18,18,4], index: 0, kind: input, shape index: {}]   ;;  %s6376_s1 = inlined_call_operand.vmem [shape: f32[9,4,128], index: 1, kind: input, shape index: {}]   ;;  %s6377_s2 = inlined_call_operand.hbm [shape: f32[2,256,128], index: 2, kind: output, shape index: {0}]   ;;  %s6378_s3 = inlined_call_operand.hbm [shape: f32[2,1,128], index: 3, kind: output, shape index: {1}]   ;;  %s6379_s4 = inlined_call_operand.hbm [shape: f32[2,1,128], index: 4, kind: output, shape index: {2}]  }
   0x1   :  { %12 = vsyncpa [#allocation3 + $0x1], 0 }
   0x2   :  { %13 = vsyncpa [#allocation5], 0 }
   0x3   :  { %15 = vsyncpa [#allocation5 + $0x1], 0  ;;  %s4584_s15 = smov 0   ;;  %s4586_s16 = smov 0  }
   0x4   :  { %s4588_s17 = smov 0   ;;  %s4590_s18 = smov 0  }
   0x5 LB: > { %s4605_s19 = sadd.s32 4294967295, %s4552_s18   ;;  %s3316_s20 = sadd.s32 4294967294, %s4552_s18   ;;  %s4552_s18 = sphi %s4590_s18, %s6679_s18   ;;  %s4548_s17 = sphi %s4588_s17, %s6678_s17   ;;  %s4544_s16 = sphi %s4586_s16, %s6677_s16   ;;  %s4540_s15 = sphi %s4584_s15, %s6676_s15  }
   0x6   : > { %s4609_s21 = sadd.s32 1, %s4552_s18   ;;  %s75_s22 = sadd.s32 1, %s4548_s17 }
   0x7   : > { %s72_s23 = ssub.s32 %s4552_s18, %s4609_s21  ;;  %p85_p0 = scmp.ne.s32.totalorder %s4548_s17, %s4544_s16 }
   0x8   : > { %p73_p1 = scmp.eq.s32.totalorder %s72_s23, 0  ;;  %p86_p2 = scmp.eq.s32.totalorder %s4605_s19, 1 }
   0x9   : > { %p91_p3 = scmp.ne.s32.totalorder %s4544_s16, %s4540_s15  ;;  %p92_p4 = scmp.eq.s32.totalorder %s3316_s20, 1 }
   0xa   : > { %s4622_s24 = scalar_select %p73_p1, %s4548_s17, %s75_s22  }
   0xb   : > { %p4624_p5 = por %p86_p2, %p85_p0  ;;  %p4628_p6 = por %p92_p4, %p91_p3 }
   0xc   : > { %p3319_p7 = scmp.ge.s32.totalorder %s4552_s18, 1  ;;  %p173_p8 = scmp.lt.s32.totalorder %s4552_s18, 3 }
   0xe   : > { %p174_p9 = pnand %p3319_p7, %p173_p8 }
  0x10   : > { %177 = sbr.rel (%p174_p9) target bundleno = 579 (0x243), region = 28 }
  0x15   : > { %v3322_v0 = vld [vmem:[%s6376_s1 + $0x4] sm:$0xf]  ;;  %vm463_vm0 = vcmask 1043456   ;;  %p207_p10 = scmp.lt.s32.totalorder %s4605_s19, 1  ;;  %v266_v1 = vld [vmem:[%s6376_s1] sm:$0xf] }
  0x16   : > { %4382 = vmatprep.subr.msk.mxu1 %vm463_vm0, %v3322_v0  ;;  %3932 = vmatprep.subr.msk.mxu0 %vm463_vm0, %v3322_v0  ;;  %v3389_v2 = vld [vmem:[%s6376_s1 + $0x8] sm:$0xf]  ;;  %vm315_vm1 = vcmask 1046528   ;;  %vm398_vm2 = vcmask 31744   ;;  %v4697_v21 = vld [vmem:[%s6376_s1 + $0xc] sm:$0xf] }
  0x17   : > { %4383 = vmatpush3.msk.msra.mxu1 %vm463_vm0, %v3322_v0  ;;  %3933 = vmatpush3.msk.msra.mxu0 %vm463_vm0, %v3322_v0  ;;  %s208_s7 = scalar_select %p207_p10, %s4605_s19, 1  ;;  %v4715_v28 = vld [vmem:[%s6376_s1 + $0x10] sm:$0xf]  ;;  %vm984_vm3 = vcmask 1045504  }
  0x18   : > { %3982 = vmatprep.subr.msk.mxu1 %vm463_vm0, %v266_v1  ;;  %4032 = vmatprep.subr.msk.mxu0 %vm463_vm0, %v3389_v2  ;;  %s4554_s28 = smov [#allocation2]  }
  0x19   : > { %s4384_s8 = smul.u32 432, %s208_s7  ;;  %s4440_s29 = sshll.u32 %s4554_s28, 4  ;;  %s4441_s29 = int_to_ptr.vmem [resolvable:$false] %s4440_s29 }
  0x1a   : > { %s4442_s30 = scalar_lea.vmem %s4441_s29, 8192 }
  0x1b   : > { %s4654_s11 = scalar_lea.vmem %s6375_s0, %s4384_s8  ;;  %s6124_s8 = sand.u32 1, %s4544_s16  }
  0x1c   : > { %v4657_v3 = vld [vmem:[%s4654_s11] sm:$0xff]  ;;  %v4660_v4 = vld [vmem:[%s4654_s11 + $0x8] sm:$0xff]  ;;  %v4672_v10 = vld [vmem:[%s4654_s11 + $0x10] sm:$0x3]  ;;  %s3320_s9 = sshll.u32 %s6124_s8, 8  ;;  %s3154_s23 = scalar_lea.sflag [#allocation3], %s6124_s8 }
  0x1d   : > { %v4663_v5 = vld [vmem:[%s4654_s11 + $0xc0] sm:$0xff]  ;;  %v316_v6 = vrot.slane %v4657_v3, 1  ;;  %v317_v7 = vrot.slane %v4660_v4, 1  ;;  %v4668_v8 = vld [vmem:[%s4654_s11 + $0xc8] sm:$0xff]  ;;  %v319_v12 = vrot.slane %v4672_v10, 1  ;;  %v4680_v14 = vld [vmem:[%s4654_s11 + $0x18] sm:$0xff] }
  0x1e   : > { %v356_v9 = vrot.slane %v4663_v5, 1  ;;  %v357_v11 = vrot.slane %v4668_v8, 1  ;;  %v4677_v13 = vld [vmem:[%s4654_s11 + $0xd0] sm:$0x3]  ;;  %v4685_v17 = vld [vmem:[%s4654_s11 + $0x20] sm:$0xff]  ;;  %v321_v18 = vrot.slane %v4680_v14, 1 }
  0x1f   : > { %v318_v15 = vsel %vm315_vm1, %v316_v6, %v317_v7  ;;  %v359_v16 = vrot.slane %v4677_v13, 1  ;;  %v4689_v19 = vld [vmem:[%s4654_s11 + $0xd8] sm:$0xff]  ;;  %v4692_v20 = vld [vmem:[%s4654_s11 + $0xe0] sm:$0xff]  ;;  %v320_v23 = vsel %vm315_vm1, %v317_v7, %v319_v12  ;;  %v322_v24 = vrot.slane %v4685_v17, 1  ;;  %v4707_v26 = vld [vmem:[%s4654_s11 + $0x28] sm:$0x3] }
  0x20   : > { %3934 = vmatprep.mubr.msk.f32.mxu0 %vm398_vm2, %v318_v15  ;;  %v4701_v22 = vsel %vm315_vm1, %v356_v9, %v357_v11  ;;  %v361_v25 = vrot.slane %v4689_v19, 1  ;;  %v4710_v27 = vld [vmem:[%s4654_s11 + $0xe8] sm:$0x3]  ;;  %v362_v30 = vrot.slane %v4692_v20, 1  ;;  %v324_v31 = vrot.slane %v4707_v26, 1  ;;  %v4727_v33 = vld [vmem:[%s4654_s11 + $0x30] sm:$0xff] }
  0x21   : > { %6464 = vst [vmem:[#allocation9_spill] sm:$0xff] %v4701_v22  ;;  %3958 = vmatprep.mubr.msk.f32.mxu1 %vm398_vm2, %v4701_v22  ;;  %3935 = vmatmul.mubr.msk.f32.vlgmr.msra.gmra.mxu0 %vm398_vm2, %v320_v23  ;;  %v4721_v29 = vsel %vm315_vm1, %v357_v11, %v359_v16  ;;  %v364_v32 = vrot.slane %v4710_v27, 1  ;;  %v4730_v34 = vld [vmem:[%s4654_s11 + $0x38] sm:$0xff]  ;;  %v4733_v35 = vld [vmem:[%s4654_s11 + $0xf0] sm:$0xff]  ;;  %v4739_v36 = vsel %vm315_vm1, %v321_v18, %v322_v24  ;;  %v326_v37 = vrot.slane %v4727_v33, 1  ;;  %v4767_v47 = vld [vmem:[%s4654_s11 + $0x48] sm:$0xff] }
  0x22   : > { %6465 = vst [vmem:[#allocation10_spill] sm:$0xff] %v4721_v29  ;;  %3959 = vmatmul.mubr.msk.f32.vlgmr.msra.gmra.mxu1 %vm398_vm2, %v4721_v29  ;;  %4033 = vmatpush3.msk.msra.mxu0 %vm463_vm0, %v3389_v2  ;;  %6466 = vst [vmem:[#allocation11_spill] sm:$0xff] %v4739_v36  ;;  %v327_v38 = vrot.slane %v4730_v34, 1  ;;  %v4744_v39 = vld [vmem:[%s4654_s11 + $0xf8] sm:$0xff]  ;;  %v366_v40 = vrot.slane %v4733_v35, 1  ;;  %v4754_v42 = vsel %vm315_vm1, %v361_v25, %v362_v30  ;;  %v4770_v48 = vld [vmem:[%s4654_s11 + $0x50] sm:$0xff] }
  0x23   : > { %v4748_v41 = vld [vmem:[%s4654_s11 + $0x40] sm:$0x3]  ;;  %3983 = vmatpush3.msk.msra.mxu1 %vm463_vm0, %v266_v1  ;;  %3937 = vmatprep.mubr.msk.f32.mxu0 %vm398_vm2, %v4739_v36  ;;  %6467 = vst [vmem:[#allocation12_spill] sm:$0xff] %v4754_v42  ;;  %v4757_v43 = vsel %vm315_vm1, %v322_v24, %v324_v31  ;;  %v4760_v44 = vsel %vm315_vm1, %v362_v30, %v364_v32  ;;  %v367_v45 = vrot.slane %v4744_v39, 1  ;;  %v331_v52 = vrot.slane %v4767_v47, 1  ;;  %v4781_v53 = vld [vmem:[%s4654_s11 + $0x108] sm:$0xff] }
  0x24   : > { %6468 = vst [vmem:[#allocation13_spill] sm:$0xff] %v4757_v43  ;;  %6469 = vst [vmem:[#allocation14_spill] sm:$0xff] %v4760_v44  ;;  %v4764_v46 = vld [vmem:[%s4654_s11 + $0x100] sm:$0x3]  ;;  %3961 = vmatprep.mubr.msk.f32.mxu1 %vm398_vm2, %v4754_v42  ;;  %v4775_v49 = vsel %vm315_vm1, %v326_v37, %v327_v38  ;;  %v329_v50 = vrot.slane %v4748_v41, 1  ;;  %v4784_v54 = vld [vmem:[%s4654_s11 + $0x110] sm:$0xff]  ;;  %4082 = vmatprep.subr.msk.mxu1 %vm463_vm0, %v4697_v21 }
  0x25   : > { %6470 = vst [vmem:[#allocation15_spill] sm:$0xff] %v4775_v49  ;;  %v369_v51 = vrot.slane %v4764_v46, 1  ;;  %v4787_v55 = vld [vmem:[%s4654_s11 + $0x60] sm:$0xff]  ;;  %3938 = vmatmul.mubr.msk.f32.gmra.mxu0 %vm398_vm2, %v4757_v43  ;;  %v4794_v56 = vsel %vm315_vm1, %v366_v40, %v367_v45  ;;  %v332_v57 = vrot.slane %v4770_v48, 1  ;;  %v371_v58 = vrot.slane %v4781_v53, 1  ;;  %v4803_v61 = vld [vmem:[%s4654_s11 + $0x68] sm:$0xff]  ;;  %4132 = vmatprep.subr.msk.mxu0 %vm463_vm0, %v4715_v28 }
  0x26   : > { %6471 = vst [vmem:[#allocation16_spill] sm:$0xff] %v4794_v56  ;;  %v372_v59 = vrot.slane %v4784_v54, 1  ;;  %v4800_v60 = vld [vmem:[%s4654_s11 + $0x58] sm:$0x3]  ;;  %3962 = vmatmul.mubr.msk.f32.gmra.mxu1 %vm398_vm2, %v4760_v44  ;;  %3940 = vmatprep.mubr.msk.f32.mxu0 %vm398_vm2, %v4775_v49  ;;  %v4812_v62 = vsel %vm315_vm1, %v327_v38, %v329_v50  ;;  %v336_v1 = vrot.slane %v4787_v55, 1  ;;  %v4820_v2 = vld [vmem:[%s4654_s11 + $0x120] sm:$0xff] }
  0x27   : > { %6472 = vst [vmem:[#allocation17_spill] sm:$0xff] %v4812_v62  ;;  %v334_v63 = vrot.slane %v4800_v60, 1  ;;  %v4816_v0 = vld [vmem:[%s4654_s11 + $0x118] sm:$0x3]  ;;  %v4823_v6 = vld [vmem:[%s4654_s11 + $0x128] sm:$0xff]  ;;  %3964 = vmatprep.mubr.msk.f32.mxu1 %vm398_vm2, %v4794_v56  ;;  %v4828_v7 = vsel %vm315_vm1, %v367_v45, %v369_v51  ;;  %v4831_v9 = vsel %vm315_vm1, %v331_v52, %v332_v57  ;;  %v337_v12 = vrot.slane %v4803_v61, 1 }
  0x28   : > { %6473 = vst [vmem:[#allocation18_spill] sm:$0xff] %v4828_v7  ;;  %6474 = vst [vmem:[#allocation19_spill] sm:$0xff] %v4831_v9  ;;  %v374_v11 = vrot.slane %v4816_v0, 1  ;;  %v4836_v15 = vld [vmem:[%s4654_s11 + $0x70] sm:$0x3]  ;;  %v4842_v18 = vsel %vm315_vm1, %v371_v58, %v372_v59  ;;  %v376_v23 = vrot.slane %v4820_v2, 1 }
  0x29   : > { %v4839_v16 = vld [vmem:[%s4654_s11 + $0x130] sm:$0x3]  ;;  %6475 = vst [vmem:[#allocation20_spill] sm:$0xff] %v4842_v18  ;;  %v377_v24 = vrot.slane %v4823_v6, 1  ;;  %v4847_v25 = vld [vmem:[%s4654_s11 + $0x78] sm:$0xff]  ;;  %v4850_v30 = vld [vmem:[%s4654_s11 + $0x80] sm:$0xff]  ;;  %3941 = vmatmul.mubr.msk.f32.gmra.mxu0 %vm398_vm2, %v4812_v62  ;;  %v4865_v37 = vsel %vm315_vm1, %v332_v57, %v334_v63  ;;  %v4875_v50 = vsel %vm315_vm1, %v336_v1, %v337_v12 }
  0x2a   : > { %v4855_v31 = vld [vmem:[%s4654_s11 + $0x138] sm:$0xff]  ;;  %v4858_v32 = vld [vmem:[%s4654_s11 + $0x140] sm:$0xff]  ;;  %3965 = vmatmul.mubr.msk.f32.gmra.mxu1 %vm398_vm2, %v4828_v7  ;;  %3943 = vmatprep.mubr.msk.f32.mxu0 %vm398_vm2, %v4831_v9  ;;  %6476 = vst [vmem:[#allocation21_spill] sm:$0xff] %v4865_v37  ;;  %v339_v38 = vrot.slane %v4836_v15, 1  ;;  %v379_v40 = vrot.slane %v4839_v16, 1  ;;  %v4872_v45 = vsel %vm315_vm1, %v372_v59, %v374_v11  ;;  %6478 = vst [vmem:[#allocation23_spill] sm:$0xff] %v4875_v50 }
  0x2b   : > { %3967 = vmatprep.mubr.msk.f32.mxu1 %vm398_vm2, %v4842_v18  ;;  %6477 = vst [vmem:[#allocation22_spill] sm:$0xff] %v4872_v45  ;;  %v341_v51 = vrot.slane %v4847_v25, 1  ;;  %v342_v52 = vrot.slane %v4850_v30, 1  ;;  %v4880_v57 = vld [vmem:[%s4654_s11 + $0x88] sm:$0x3]  ;;  %v4886_v63 = vsel %vm315_vm1, %v376_v23, %v377_v24  ;;  %v381_v7 = vrot.slane %v4855_v31, 1 }
  0x2c   : > { %v4883_v58 = vld [vmem:[%s4654_s11 + $0x148] sm:$0x3]  ;;  %6479 = vst [vmem:[#allocation24_spill] sm:$0xff] %v4886_v63  ;;  %v382_v18 = vrot.slane %v4858_v32, 1  ;;  %v4891_v59 = vld [vmem:[%s4654_s11 + $0x90] sm:$0xff]  ;;  %v4894_v1 = vld [vmem:[%s4654_s11 + $0x98] sm:$0xff]  ;;  %v4909_v23 = vsel %vm315_vm1, %v337_v12, %v339_v38  ;;  %v4916_v29 = vsel %vm315_vm1, %v377_v24, %v379_v40 }
  0x2d   : > { %3944 = vmatmul.mubr.msk.f32.gmra.mxu0 %vm398_vm2, %v4865_v37  ;;  %v4899_v11 = vld [vmem:[%s4654_s11 + $0x150] sm:$0xff]  ;;  %v4902_v56 = vld [vmem:[%s4654_s11 + $0x158] sm:$0xff]  ;;  %6481 = vst [vmem:[#allocation26_spill] sm:$0xff] %v4909_v23  ;;  %v344_v44 = vrot.slane %v4880_v57, 1  ;;  %v384_v42 = vrot.slane %v4883_v58, 1  ;;  %6482 = vst [vmem:[#allocation27_spill] sm:$0xff] %v4916_v29 }
  0x2e   : > { %6480 = vst [vmem:[#allocation25_spill] sm:$0xff] %v4902_v56  ;;  %3968 = vmatmul.mubr.msk.f32.gmra.mxu1 %vm398_vm2, %v4872_v45  ;;  %3946 = vmatprep.mubr.msk.f32.mxu0 %vm398_vm2, %v4875_v50  ;;  %v4919_v45 = vsel %vm315_vm1, %v341_v51, %v342_v52  ;;  %v346_v22 = vrot.slane %v4891_v59, 1  ;;  %v347_v12 = vrot.slane %v4894_v1, 1  ;;  %v4924_v38 = vld [vmem:[%s4654_s11 + $0xa0] sm:$0x3]  ;;  %v4927_v50 = vsel %vm315_vm1, %v381_v7, %v382_v18  ;;  %v4935_v24 = vld [vmem:[%s4654_s11 + $0xa8] sm:$0xff] }
  0x2f   : > { %3970 = vmatprep.mubr.msk.f32.mxu1 %vm398_vm2, %v4886_v63  ;;  %6483 = vst [vmem:[#allocation28_spill] sm:$0xff] %v4919_v45  ;;  %6484 = vst [vmem:[#allocation29_spill] sm:$0xff] %v4927_v50  ;;  %v386_v37 = vrot.slane %v4899_v11, 1  ;;  %v387_v9 = vrot.slane %v4902_v56, 1  ;;  %v4932_v63 = vld [vmem:[%s4654_s11 + $0x160] sm:$0x3]  ;;  %v4953_v7 = vsel %vm315_vm1, %v342_v52, %v344_v44  ;;  %v4956_v49 = vsel %vm315_vm1, %v382_v18, %v384_v42 }
  0x30   : > { %v4938_v40 = vld [vmem:[%s4654_s11 + $0xb0] sm:$0xff]  ;;  %v4943_v51 = vld [vmem:[%s4654_s11 + $0x168] sm:$0xff]  ;;  %6486 = vst [vmem:[#allocation31_spill] sm:$0xff] %v4953_v7  ;;  %6487 = vst [vmem:[#allocation32_spill] sm:$0xff] %v4956_v49  ;;  %v349_v43 = vrot.slane %v4924_v38, 1  ;;  %v389_v36 = vrot.slane %v4932_v63, 1 }
  0x31   : > { %3947 = vmatmul.mubr.msk.f32.gmra.mxu0 %vm398_vm2, %v4909_v23  ;;  %v4946_v62 = vld [vmem:[%s4654_s11 + $0x170] sm:$0xff]  ;;  %v4962_v23 = vsel %vm315_vm1, %v346_v22, %v347_v12  ;;  %v4968_v56 = vld [vmem:[%s4654_s11 + $0xb8] sm:$0x3]  ;;  %v4971_v44 = vsel %vm315_vm1, %v386_v37, %v387_v9  ;;  %v391_v42 = vrot.slane %v4943_v51, 1  ;;  %s6144_s10 = scalar_lea.vmem [#allocation2], %s3320_s9 }
  0x32   : > { %6485 = vst [vmem:[#allocation30_spill] sm:$0xff] %v4946_v62  ;;  %3971 = vmatmul.mubr.msk.f32.gmra.mxu1 %vm398_vm2, %v4916_v29  ;;  %3949 = vmatprep.mubr.msk.f32.mxu0 %vm398_vm2, %v4919_v45  ;;  %6488 = vst [vmem:[#allocation33_spill] sm:$0xff] %v4962_v23  ;;  %v351_v29 = vrot.slane %v4935_v24, 1  ;;  %v352_v45 = vrot.slane %v4938_v40, 1  ;;  %v392_v18 = vrot.slane %v4946_v62, 1  ;;  %v4985_v22 = vsel %vm315_vm1, %v347_v12, %v349_v43  ;;  %s3175_s12 = sshll.u32 %s6144_s10, 4  ;;  %s6263_s12 = int_to_ptr.vmem [resolvable:$true] %s3175_s12 }
  0x33   : > { %3973 = vmatprep.mubr.msk.f32.mxu1 %vm398_vm2, %v4927_v50  ;;  %6489 = vst [vmem:[#allocation34_spill] sm:$0xff] %v4971_v44  ;;  %v4976_v52 = vld [vmem:[%s4654_s11 + $0x178] sm:$0x3]  ;;  %6490 = vst [vmem:[#allocation35_spill] sm:$0xff] %v4985_v22  ;;  %v354_v37 = vrot.slane %v4968_v56, 1  ;;  %v985_v50 = vrot.slane %v4657_v3, 2  ;;  %v4992_v62 = vsel %vm315_vm1, %v387_v9, %v389_v36  ;;  %p4443_p0 = scmp.lt.s32.totalorder %s6263_s12, %s4441_s29 }
  0x34   : > { %6491 = vst [vmem:[#allocation36_spill] sm:$0xff] %v4992_v62  ;;  %v5000_v43 = vsel %vm315_vm1, %v391_v42, %v392_v18  ;;  %v988_v12 = vrot.slane %v4672_v10, 2  ;;  %v990_v10 = vrot.slane %v4680_v14, 2  ;;  %v991_v42 = vrot.slane %v4685_v17, 2  ;;  %s4436_s27 = scalar_lea.vmem %s6263_s12, 4096 }
  0x35   : > { %3950 = vmatmul.mubr.msk.f32.gmra.mxu0 %vm398_vm2, %v4953_v7  ;;  %v4995_v7 = vsel %vm315_vm1, %v351_v29, %v352_v45  ;;  %6493 = vst [vmem:[#allocation38_spill] sm:$0xff] %v5000_v43  ;;  %v5010_v29 = vsel %vm315_vm1, %v352_v45, %v354_v37  ;;  %v993_v37 = vrot.slane %v4707_v26, 2  ;;  %v998_v26 = vrot.slane %v4748_v41, 2  ;;  %p4437_p11 = scmp.ne.s32.totalorder %s6263_s12, %s4436_s27  ;;  %p4444_p1 = scmp.lt.s32.totalorder %s4442_s30, %s4436_s27 }
  0x36   : > { %3974 = vmatmul.mubr.msk.f32.gmra.mxu1 %vm398_vm2, %v4956_v49  ;;  %3952 = vmatprep.mubr.msk.f32.mxu0 %vm398_vm2, %v4962_v23  ;;  %6492 = vst [vmem:[#allocation37_spill] sm:$0xff] %v4995_v7  ;;  %v394_v49 = vrot.slane %v4976_v52, 1  ;;  %v986_v23 = vrot.slane %v4660_v4, 2  ;;  %6494 = vst [vmem:[#allocation39_spill] sm:$0xff] %v5010_v29  ;;  %v1003_v41 = vrot.slane %v4800_v60, 2 }
  0x37   : > { %3976 = vmatprep.mubr.msk.f32.mxu1 %vm398_vm2, %v4971_v44  ;;  %p4438_p12 = pnand %p4437_p11, %p4624_p5  ;;  %p4445_p2 = por %p4444_p1, %p4443_p0 }
  0x38   : > { %v5015_v36 = vsel %vm315_vm1, %v392_v18, %v394_v49  ;;  %v987_v9 = vsel %vm984_vm3, %v985_v50, %v986_v23  ;;  %v989_v45 = vsel %vm984_vm3, %v986_v23, %v988_v12  ;;  %v995_v49 = vrot.slane %v4727_v33, 2  ;;  %v5051_v23 = vld [vmem:[%s6376_s1 + $0x18] sm:$0xf] }
  0x39   : > { %3953 = vmatmul.mubr.msk.f32.gmra.mxu0 %vm398_vm2, %v4985_v22  ;;  %6495 = vst [vmem:[#allocation40_spill] sm:$0xff] %v5015_v36  ;;  %v996_v50 = vrot.slane %v4730_v34, 2  ;;  %v5033_v18 = vsel %vm984_vm3, %v990_v10, %v991_v42  ;;  %v1001_v12 = vrot.slane %v4770_v48, 2  ;;  %p4439_p13 = pneg %p4438_p12 }
  0x3a   : > { %3977 = vmatmul.mubr.msk.f32.gmra.mxu1 %vm398_vm2, %v4992_v62  ;;  %3955 = vmatprep.mubr.msk.f32.mxu0 %vm398_vm2, %v4995_v7 }
  0x3b   : > { %3979 = vmatprep.mubr.msk.f32.mxu1 %vm398_vm2, %v5000_v43  ;;  %v5092_v60 = vsel %vm984_vm3, %v1001_v12, %v1003_v41  ;;  %v1015_v41 = vrot.slane %v4891_v59, 2  ;;  %p4446_p3 = pnand %p4445_p2, %p4439_p13 }
  0x3d   : > { %3956 = vmatmul.mubr.msk.f32.gmra.mxu0 %vm398_vm2, %v5010_v29 }
  0x3e   : > { %3980 = vmatmul.mubr.msk.f32.gmra.mxu1 %vm398_vm2, %v5015_v36  ;;  %4034 = vmatprep.mubr.msk.f32.mxu0 %vm398_vm2, %v987_v9  ;;  %v5038_v9 = vld [vmem:[%s6376_s1 + $0x14] sm:$0xf] }
  0x3f   : > { %3984 = vmatprep.mubr.msk.f32.mxu1 %vm398_vm2, %v4657_v3  ;;  %v5045_v3 = vsel %vm984_vm3, %v991_v42, %v993_v37  ;;  %v1005_v42 = vrot.slane %v4787_v55, 2  ;;  %v1008_v37 = vrot.slane %v4836_v15, 2 }
  0x41   : > { %4035 = vmatmul.mubr.msk.f32.vlgmr.msra.gmra.mxu0 %vm398_vm2, %v989_v45  ;;  %v1006_v45 = vrot.slane %v4803_v61, 2 }
  0x42   : > { %3985 = vmatmul.mubr.msk.f32.vlgmr.msra.gmra.mxu1 %vm398_vm2, %v4660_v4  ;;  %4133 = vmatpush3.msk.msra.mxu0 %vm463_vm0, %v4715_v28  ;;  %v5058_v4 = vsel %vm984_vm3, %v995_v49, %v996_v50  ;;  %v1000_v28 = vrot.slane %v4767_v47, 2 }
  0x43   : > { %4083 = vmatpush3.msk.msra.mxu1 %vm463_vm0, %v4697_v21  ;;  %3987 = vmatprep.mubr.msk.f32.mxu1 %vm398_vm2, %v4680_v14  ;;  %v5075_v21 = vsel %vm984_vm3, %v996_v50, %v998_v26  ;;  %v5098_v49 = vsel %vm984_vm3, %v1005_v42, %v1006_v45  ;;  %v1010_v50 = vrot.slane %v4847_v25, 2  ;;  %v1011_v26 = vrot.slane %v4850_v30, 2 }
  0x44   : > { %4037 = vmatprep.mubr.msk.f32.mxu0 %vm398_vm2, %v5033_v18  ;;  %4182 = vmatprep.subr.msk.mxu1 %vm463_vm0, %v5038_v9  ;;  %v5081_v10 = vsel %vm984_vm3, %v1000_v28, %v1001_v12  ;;  %v5109_v15 = vsel %vm984_vm3, %v1006_v45, %v1008_v37  ;;  %v1013_v28 = vrot.slane %v4880_v57, 2  ;;  %v1016_v42 = vrot.slane %v4894_v1, 2 }
  0x45   : > { %4038 = vmatmul.mubr.msk.f32.gmra.mxu0 %vm398_vm2, %v5045_v3  ;;  %4232 = vmatprep.subr.msk.mxu0 %vm463_vm0, %v5051_v23  ;;  %6496 = vst [vmem:[#allocation41_spill] sm:$0xff] %v5109_v15  ;;  %v5115_v12 = vsel %vm984_vm3, %v1010_v50, %v1011_v26  ;;  %v1018_v45 = vrot.slane %v4924_v38, 2  ;;  %v1020_v50 = vrot.slane %v4935_v24, 2 }
  0x46   : > { %3988 = vmatmul.mubr.msk.f32.gmra.mxu1 %vm398_vm2, %v4685_v17  ;;  %4040 = vmatprep.mubr.msk.f32.mxu0 %vm398_vm2, %v5058_v4  ;;  %v5126_v57 = vsel %vm984_vm3, %v1011_v26, %v1013_v28  ;;  %v5132_v37 = vsel %vm984_vm3, %v1015_v41, %v1016_v42  ;;  %v1023_v26 = vrot.slane %v4968_v56, 2  ;;  %v1025_v41 = vrot.slane %v4663_v5, 2 }
  0x47   : > { %3990 = vmatprep.mubr.msk.f32.mxu1 %vm398_vm2, %v4727_v33  ;;  %6497 = vst [vmem:[#allocation42_spill] sm:$0xff] %v5126_v57  ;;  %v5143_v38 = vsel %vm984_vm3, %v1016_v42, %v1018_v45  ;;  %v1028_v42 = vrot.slane %v4677_v13, 2 }
  0x48   : > { %6498 = vst [vmem:[#allocation43_spill] sm:$0xff] %v5143_v38 }
  0x49   : > { %4041 = vmatmul.mubr.msk.f32.gmra.mxu0 %vm398_vm2, %v5075_v21 }
  0x4a   : > { %3991 = vmatmul.mubr.msk.f32.gmra.mxu1 %vm398_vm2, %v4730_v34  ;;  %4043 = vmatprep.mubr.msk.f32.mxu0 %vm398_vm2, %v5081_v10 }
  0x4b   : > { %3993 = vmatprep.mubr.msk.f32.mxu1 %vm398_vm2, %v4767_v47 }
  0x4d   : > { %4044 = vmatmul.mubr.msk.f32.gmra.mxu0 %vm398_vm2, %v5092_v60 }
  0x4e   : > { %3994 = vmatmul.mubr.msk.f32.gmra.mxu1 %vm398_vm2, %v4770_v48  ;;  %4046 = vmatprep.mubr.msk.f32.mxu0 %vm398_vm2, %v5098_v49 }
  0x4f   : > { %3996 = vmatprep.mubr.msk.f32.mxu1 %vm398_vm2, %v4787_v55 }
  0x51   : > { %4047 = vmatmul.mubr.msk.f32.gmra.mxu0 %vm398_vm2, %v5109_v15  ;;  %v1021_v15 = vrot.slane %v4938_v40, 2 }
  0x52   : > { %3997 = vmatmul.mubr.msk.f32.gmra.mxu1 %vm398_vm2, %v4803_v61  ;;  %4049 = vmatprep.mubr.msk.f32.mxu0 %vm398_vm2, %v5115_v12 }
  0x53   : > { %3999 = vmatprep.mubr.msk.f32.mxu1 %vm398_vm2, %v4847_v25  ;;  %v5149_v28 = vsel %vm984_vm3, %v1020_v50, %v1021_v15  ;;  %v5160_v56 = vsel %vm984_vm3, %v1021_v15, %v1023_v26  ;;  %v1030_v50 = vrot.slane %v4689_v19, 2  ;;  %v1033_v15 = vrot.slane %v4710_v27, 2 }
  0x54   : > { %6499 = vst [vmem:[#allocation44_spill] sm:$0xff] %v5160_v56 }
  0x55   : > { %4050 = vmatmul.mubr.msk.f32.gmra.mxu0 %vm398_vm2, %v5126_v57  ;;  %v1026_v57 = vrot.slane %v4668_v8, 2 }
  0x56   : > { %4000 = vmatmul.mubr.msk.f32.gmra.mxu1 %vm398_vm2, %v4850_v30  ;;  %4052 = vmatprep.mubr.msk.f32.mxu0 %vm398_vm2, %v5132_v37 }
  0x57   : > { %4002 = vmatprep.mubr.msk.f32.mxu1 %vm398_vm2, %v4891_v59  ;;  %v5166_v45 = vsel %vm984_vm3, %v1025_v41, %v1026_v57  ;;  %v5177_v13 = vsel %vm984_vm3, %v1026_v57, %v1028_v42  ;;  %v1035_v41 = vrot.slane %v4733_v35, 2  ;;  %v1038_v57 = vrot.slane %v4764_v46, 2 }
  0x58   : > { %6500 = vst [vmem:[#allocation45_spill] sm:$0xff] %v5177_v13 }
  0x59   : > { %4053 = vmatmul.mubr.msk.f32.gmra.mxu0 %vm398_vm2, %v5143_v38  ;;  %v1031_v38 = vrot.slane %v4692_v20, 2 }
  0x5a   : > { %4003 = vmatmul.mubr.msk.f32.gmra.mxu1 %vm398_vm2, %v4894_v1  ;;  %4055 = vmatprep.mubr.msk.f32.mxu0 %vm398_vm2, %v5149_v28 }
  0x5b   : > { %4005 = vmatprep.mubr.msk.f32.mxu1 %vm398_vm2, %v4935_v24  ;;  %v5183_v26 = vsel %vm984_vm3, %v1030_v50, %v1031_v38  ;;  %v5194_v27 = vsel %vm984_vm3, %v1031_v38, %v1033_v15  ;;  %v1040_v50 = vrot.slane %v4781_v53, 2  ;;  %v1043_v38 = vrot.slane %v4816_v0, 2 }
  0x5c   : > { %6501 = vst [vmem:[#allocation46_spill] sm:$0xff] %v5194_v27 }
  0x5d   : > { %4056 = vmatmul.mubr.msk.f32.gmra.mxu0 %vm398_vm2, %v5160_v56  ;;  %v1036_v56 = vrot.slane %v4744_v39, 2 }
  0x5e   : > { %4006 = vmatmul.mubr.msk.f32.gmra.mxu1 %vm398_vm2, %v4938_v40  ;;  %4058 = vmatprep.mubr.msk.f32.mxu0 %vm398_vm2, %v5166_v45 }
  0x5f   : > { %4008 = vmatprep.mubr.msk.f32.mxu1 %vm398_vm2, %v4663_v5  ;;  %v5200_v42 = vsel %vm984_vm3, %v1035_v41, %v1036_v56  ;;  %v5211_v46 = vsel %vm984_vm3, %v1036_v56, %v1038_v57  ;;  %v1045_v41 = vrot.slane %v4820_v2, 2  ;;  %v1048_v56 = vrot.slane %v4839_v16, 2 }
  0x60   : > { %6502 = vst [vmem:[#allocation47_spill] sm:$0xff] %v5211_v46 }
  0x61   : > { %4059 = vmatmul.mubr.msk.f32.gmra.mxu0 %vm398_vm2, %v5177_v13  ;;  %v1041_v13 = vrot.slane %v4784_v54, 2 }
  0x62   : > { %4009 = vmatmul.mubr.msk.f32.gmra.mxu1 %vm398_vm2, %v4668_v8  ;;  %4061 = vmatprep.mubr.msk.f32.mxu0 %vm398_vm2, %v5183_v26 }
  0x63   : > { %4011 = vmatprep.mubr.msk.f32.mxu1 %vm398_vm2, %v4689_v19  ;;  %v5217_v15 = vsel %vm984_vm3, %v1040_v50, %v1041_v13  ;;  %v5228_v0 = vsel %vm984_vm3, %v1041_v13, %v1043_v38  ;;  %v1050_v50 = vrot.slane %v4855_v31, 2  ;;  %v1053_v13 = vrot.slane %v4883_v58, 2 }
  0x64   : > { %6503 = vst [vmem:[#allocation48_spill] sm:$0xff] %v5217_v15  ;;  %6504 = vst [vmem:[#allocation49_spill] sm:$0xff] %v5228_v0 }
  0x65   : > { %4062 = vmatmul.mubr.msk.f32.gmra.mxu0 %vm398_vm2, %v5194_v27  ;;  %v1046_v27 = vrot.slane %v4823_v6, 2 }
  0x66   : > { %4012 = vmatmul.mubr.msk.f32.gmra.mxu1 %vm398_vm2, %v4692_v20  ;;  %4064 = vmatprep.mubr.msk.f32.mxu0 %vm398_vm2, %v5200_v42 }
  0x67   : > { %4014 = vmatprep.mubr.msk.f32.mxu1 %vm398_vm2, %v4733_v35  ;;  %v5234_v57 = vsel %vm984_vm3, %v1045_v41, %v1046_v27  ;;  %v5245_v16 = vsel %vm984_vm3, %v1046_v27, %v1048_v56  ;;  %v1055_v41 = vrot.slane %v4899_v11, 2  ;;  %v1058_v27 = vrot.slane %v4932_v63, 2 }
  0x68   : > { %6505 = vst [vmem:[#allocation50_spill] sm:$0xff] %v5234_v57  ;;  %6506 = vst [vmem:[#allocation51_spill] sm:$0xff] %v5245_v16 }
  0x69   : > { %4065 = vmatmul.mubr.msk.f32.gmra.mxu0 %vm398_vm2, %v5211_v46  ;;  %v1051_v46 = vrot.slane %v4858_v32, 2 }
  0x6a   : > { %4015 = vmatmul.mubr.msk.f32.gmra.mxu1 %vm398_vm2, %v4744_v39  ;;  %4067 = vmatprep.mubr.msk.f32.mxu0 %vm398_vm2, %v5217_v15 }
  0x6b   : > { %4017 = vmatprep.mubr.msk.f32.mxu1 %vm398_vm2, %v4781_v53  ;;  %v5251_v38 = vsel %vm984_vm3, %v1050_v50, %v1051_v46  ;;  %v5262_v58 = vsel %vm984_vm3, %v1051_v46, %v1053_v13  ;;  %v1060_v50 = vrot.slane %v4943_v51, 2  ;;  %v1063_v46 = vrot.slane %v4976_v52, 2  ;;  %v6510_v52 = vld [vmem:[#allocation11_spill] sm:$0xff] }
  0x6d   : > { %4068 = vmatmul.mubr.msk.f32.gmra.mxu0 %vm398_vm2, %v5228_v0  ;;  %v6507_v0 = vld [vmem:[#allocation25_spill] sm:$0xff] }
  0x6e   : > { %4018 = vmatmul.mubr.msk.f32.gmra.mxu1 %vm398_vm2, %v4784_v54  ;;  %4070 = vmatprep.mubr.msk.f32.mxu0 %vm398_vm2, %v5234_v57  ;;  %v1056_v15 = vrot.slane %v6507_v0, 2 }
  0x6f   : > { %4020 = vmatprep.mubr.msk.f32.mxu1 %vm398_vm2, %v4820_v2 }
  0x70   : > { %v5268_v56 = vsel %vm984_vm3, %v1055_v41, %v1056_v15  ;;  %v5279_v63 = vsel %vm984_vm3, %v1056_v15, %v1058_v27  ;;  %v6511_v41 = vld [vmem:[#allocation13_spill] sm:$0xff]  ;;  %v5320_v27 = vld [vmem:[%s6376_s1 + $0x20] sm:$0xf] }
  0x71   : > { %4071 = vmatmul.mubr.msk.f32.gmra.mxu0 %vm398_vm2, %v5245_v16  ;;  %v6508_v16 = vld [vmem:[#allocation30_spill] sm:$0xff] }
  0x72   : > { %4021 = vmatmul.mubr.msk.f32.gmra.mxu1 %vm398_vm2, %v4823_v6  ;;  %4073 = vmatprep.mubr.msk.f32.mxu0 %vm398_vm2, %v5251_v38  ;;  %v1061_v57 = vrot.slane %v6508_v16, 2 }
  0x73   : > { %4023 = vmatprep.mubr.msk.f32.mxu1 %vm398_vm2, %v4855_v31 }
  0x74   : > { %v5285_v13 = vsel %vm984_vm3, %v1060_v50, %v1061_v57  ;;  %v5294_v15 = vsel %vm984_vm3, %v1061_v57, %v1063_v46  ;;  %v5311_v57 = vld [vmem:[%s6376_s1 + $0x1c] sm:$0xf]  ;;  %v6516_v50 = vld [vmem:[#allocation23_spill] sm:$0xff]  ;;  %v6517_v46 = vld [vmem:[#allocation26_spill] sm:$0xff] }
  0x75   : > { %4074 = vmatmul.mubr.msk.f32.gmra.mxu0 %vm398_vm2, %v5262_v58  ;;  %6509 = vst [vmem:[#allocation25_spill] sm:$0xff] %v5294_v15 }
  0x76   : > { %4024 = vmatmul.mubr.msk.f32.gmra.mxu1 %vm398_vm2, %v4858_v32  ;;  %4076 = vmatprep.mubr.msk.f32.mxu0 %vm398_vm2, %v5268_v56 }
  0x77   : > { %4026 = vmatprep.mubr.msk.f32.mxu1 %vm398_vm2, %v4899_v11 }
  0x79   : > { %4077 = vmatmul.mubr.msk.f32.gmra.mxu0 %vm398_vm2, %v5279_v63 }
  0x7a   : > { %4027 = vmatmul.mubr.msk.f32.gmra.mxu1 %vm398_vm2, %v6507_v0  ;;  %4079 = vmatprep.mubr.msk.f32.mxu0 %vm398_vm2, %v5285_v13 }
  0x7b   : > { %4029 = vmatprep.mubr.msk.f32.mxu1 %vm398_vm2, %v4943_v51 }
  0x7d   : > { %4080 = vmatmul.mubr.msk.f32.gmra.mxu0 %vm398_vm2, %v5294_v15 }
  0x7e   : > { %4030 = vmatmul.mubr.msk.f32.gmra.mxu1 %vm398_vm2, %v6508_v16  ;;  %4134 = vmatprep.mubr.msk.f32.mxu0 %vm398_vm2, %v6510_v52  ;;  %v6518_v52 = vld [vmem:[#allocation28_spill] sm:$0xff] }
  0x7f   : > { %4084 = vmatprep.mubr.msk.f32.mxu1 %vm398_vm2, %v4680_v14  ;;  %v6512_v14 = vld [vmem:[#allocation15_spill] sm:$0xff] }
  0x81   : > { %4135 = vmatmul.mubr.msk.f32.vlgmr.msra.gmra.mxu0 %vm398_vm2, %v6511_v41  ;;  %v6519_v41 = vld [vmem:[#allocation31_spill] sm:$0xff] }
  0x82   : > { %4085 = vmatmul.mubr.msk.f32.vlgmr.msra.gmra.mxu1 %vm398_vm2, %v4685_v17  ;;  %4233 = vmatpush3.msk.msra.mxu0 %vm463_vm0, %v5051_v23  ;;  %v6513_v17 = vld [vmem:[#allocation17_spill] sm:$0xff]  ;;  %v6514_v23 = vld [vmem:[#allocation19_spill] sm:$0xff] }
  0x83   : > { %4183 = vmatpush3.msk.msra.mxu1 %vm463_vm0, %v5038_v9  ;;  %4087 = vmatprep.mubr.msk.f32.mxu1 %vm398_vm2, %v4727_v33  ;;  %v6515_v9 = vld [vmem:[#allocation21_spill] sm:$0xff] }
  0x84   : > { %4137 = vmatprep.mubr.msk.f32.mxu0 %vm398_vm2, %v6512_v14  ;;  %4282 = vmatprep.subr.msk.mxu1 %vm463_vm0, %v5311_v57 }
  0x85   : > { %4138 = vmatmul.mubr.msk.f32.gmra.mxu0 %vm398_vm2, %v6513_v17  ;;  %4332 = vmatprep.subr.msk.mxu0 %vm463_vm0, %v5320_v27 }
  0x86   : > { %4088 = vmatmul.mubr.msk.f32.gmra.mxu1 %vm398_vm2, %v4730_v34  ;;  %4140 = vmatprep.mubr.msk.f32.mxu0 %vm398_vm2, %v6514_v23 }
  0x87   : > { %4090 = vmatprep.mubr.msk.f32.mxu1 %vm398_vm2, %v4767_v47 }
  0x89   : > { %4141 = vmatmul.mubr.msk.f32.gmra.mxu0 %vm398_vm2, %v6515_v9 }
  0x8a   : > { %4091 = vmatmul.mubr.msk.f32.gmra.mxu1 %vm398_vm2, %v4770_v48  ;;  %4143 = vmatprep.mubr.msk.f32.mxu0 %vm398_vm2, %v6516_v50  ;;  %v6520_v50 = vld [vmem:[#allocation33_spill] sm:$0xff] }
  0x8b   : > { %4093 = vmatprep.mubr.msk.f32.mxu1 %vm398_vm2, %v4787_v55 }
  0x8d   : > { %4144 = vmatmul.mubr.msk.f32.gmra.mxu0 %vm398_vm2, %v6517_v46 }
  0x8e   : > { %4094 = vmatmul.mubr.msk.f32.gmra.mxu1 %vm398_vm2, %v4803_v61  ;;  %4146 = vmatprep.mubr.msk.f32.mxu0 %vm398_vm2, %v6518_v52  ;;  %v5437_v52 = vld [vmem:[%s4654_s11 + $0x190] sm:$0x3] }
  0x8f   : > { %4096 = vmatprep.mubr.msk.f32.mxu1 %vm398_vm2, %v4847_v25 }
  0x91   : > { %4147 = vmatmul.mubr.msk.f32.gmra.mxu0 %vm398_vm2, %v6519_v41  ;;  %v5424_v41 = vld [vmem:[%s4654_s11 + $0x188] sm:$0xff] }
  0x92   : > { %4097 = vmatmul.mubr.msk.f32.gmra.mxu1 %vm398_vm2, %v4850_v30  ;;  %4149 = vmatprep.mubr.msk.f32.mxu0 %vm398_vm2, %v6520_v50  ;;  %v6521_v50 = vld [vmem:[#allocation9_spill] sm:$0xff] }
  0x93   : > { %4099 = vmatprep.mubr.msk.f32.mxu1 %vm398_vm2, %v4891_v59 }
  0x95   : > { %4150 = vmatmul.mubr.msk.f32.gmra.mxu0 %vm398_vm2, %v4985_v22  ;;  %v6522_v22 = vld [vmem:[#allocation10_spill] sm:$0xff] }
  0x96   : > { %4100 = vmatmul.mubr.msk.f32.gmra.mxu1 %vm398_vm2, %v4894_v1  ;;  %4152 = vmatprep.mubr.msk.f32.mxu0 %vm398_vm2, %v4995_v7  ;;  %v6523_v7 = vld [vmem:[#allocation12_spill] sm:$0xff] }
  0x97   : > { %4102 = vmatprep.mubr.msk.f32.mxu1 %vm398_vm2, %v4935_v24 }
  0x99   : > { %4153 = vmatmul.mubr.msk.f32.gmra.mxu0 %vm398_vm2, %v5010_v29  ;;  %v6524_v29 = vld [vmem:[#allocation14_spill] sm:$0xff] }
  0x9a   : > { %4103 = vmatmul.mubr.msk.f32.gmra.mxu1 %vm398_vm2, %v4938_v40  ;;  %4155 = vmatprep.mubr.msk.f32.mxu0 %vm398_vm2, %v6521_v50  ;;  %v6525_v50 = vld [vmem:[#allocation16_spill] sm:$0xff] }
  0x9b   : > { %4105 = vmatprep.mubr.msk.f32.mxu1 %vm398_vm2, %v4663_v5 }
  0x9d   : > { %4156 = vmatmul.mubr.msk.f32.gmra.mxu0 %vm398_vm2, %v6522_v22  ;;  %v6526_v22 = vld [vmem:[#allocation18_spill] sm:$0xff] }
  0x9e   : > { %4106 = vmatmul.mubr.msk.f32.gmra.mxu1 %vm398_vm2, %v4668_v8  ;;  %4158 = vmatprep.mubr.msk.f32.mxu0 %vm398_vm2, %v6523_v7  ;;  %v6527_v7 = vld [vmem:[#allocation20_spill] sm:$0xff] }
  0x9f   : > { %4108 = vmatprep.mubr.msk.f32.mxu1 %vm398_vm2, %v4689_v19 }
  0xa1   : > { %4159 = vmatmul.mubr.msk.f32.gmra.mxu0 %vm398_vm2, %v6524_v29  ;;  %v6528_v29 = vld [vmem:[#allocation22_spill] sm:$0xff] }
  0xa2   : > { %4109 = vmatmul.mubr.msk.f32.gmra.mxu1 %vm398_vm2, %v4692_v20  ;;  %4161 = vmatprep.mubr.msk.f32.mxu0 %vm398_vm2, %v6525_v50  ;;  %v6529_v50 = vld [vmem:[#allocation24_spill] sm:$0xff] }
  0xa3   : > { %4111 = vmatprep.mubr.msk.f32.mxu1 %vm398_vm2, %v4733_v35 }
  0xa5   : > { %4162 = vmatmul.mubr.msk.f32.gmra.mxu0 %vm398_vm2, %v6526_v22  ;;  %v6530_v22 = vld [vmem:[#allocation27_spill] sm:$0xff] }
  0xa6   : > { %4112 = vmatmul.mubr.msk.f32.gmra.mxu1 %vm398_vm2, %v4744_v39  ;;  %4164 = vmatprep.mubr.msk.f32.mxu0 %vm398_vm2, %v6527_v7  ;;  %v6531_v7 = vld [vmem:[#allocation29_spill] sm:$0xff] }
  0xa7   : > { %4114 = vmatprep.mubr.msk.f32.mxu1 %vm398_vm2, %v4781_v53 }
  0xa9   : > { %4165 = vmatmul.mubr.msk.f32.gmra.mxu0 %vm398_vm2, %v6528_v29  ;;  %v5421_v29 = vld [vmem:[%s4654_s11 + $0x180] sm:$0xff] }
  0xaa   : > { %4115 = vmatmul.mubr.msk.f32.gmra.mxu1 %vm398_vm2, %v4784_v54  ;;  %4167 = vmatprep.mubr.msk.f32.mxu0 %vm398_vm2, %v6529_v50  ;;  %v6532_v50 = vld [vmem:[#allocation32_spill] sm:$0xff] }
  0xab   : > { %4117 = vmatprep.mubr.msk.f32.mxu1 %vm398_vm2, %v4820_v2 }
  0xad   : > { %4168 = vmatmul.mubr.msk.f32.gmra.mxu0 %vm398_vm2, %v6530_v22  ;;  %v1661_v22 = vrot.slane %v5424_v41, 1 }
  0xae   : > { %4118 = vmatmul.mubr.msk.f32.gmra.mxu1 %vm398_vm2, %v4823_v6  ;;  %4170 = vmatprep.mubr.msk.f32.mxu0 %vm398_vm2, %v6531_v7  ;;  %v1660_v7 = vrot.slane %v5421_v29, 1 }
  0xaf   : > { %4120 = vmatprep.mubr.msk.f32.mxu1 %vm398_vm2, %v4855_v31 }
  0xb1   : > { %4171 = vmatmul.mubr.msk.f32.gmra.mxu0 %vm398_vm2, %v6532_v50  ;;  %v5449_v50 = vsel %vm315_vm1, %v1660_v7, %v1661_v22 }
  0xb2   : > { %4121 = vmatmul.mubr.msk.f32.gmra.mxu1 %vm398_vm2, %v4858_v32  ;;  %4173 = vmatprep.mubr.msk.f32.mxu0 %vm398_vm2, %v4971_v44  ;;  %v1663_v44 = vrot.slane %v5437_v52, 1  ;;  %6533 = vst [vmem:[#allocation30_spill] sm:$0xff] %v5449_v50 }
  0xb3   : > { %4123 = vmatprep.mubr.msk.f32.mxu1 %vm398_vm2, %v4899_v11 }
  0xb5   : > { %4174 = vmatmul.mubr.msk.f32.gmra.mxu0 %vm398_vm2, %v4992_v62  ;;  %v5458_v62 = vsel %vm315_vm1, %v1661_v22, %v1663_v44  ;;  %v6545_v22 = vld [vmem:[#allocation51_spill] sm:$0xff] }
  0xb6   : > { %4124 = vmatmul.mubr.msk.f32.gmra.mxu1 %vm398_vm2, %v6507_v0  ;;  %4176 = vmatprep.mubr.msk.f32.mxu0 %vm398_vm2, %v5000_v43  ;;  %6534 = vst [vmem:[#allocation11_spill] sm:$0xff] %v5458_v62 }
  0xb7   : > { %4126 = vmatprep.mubr.msk.f32.mxu1 %vm398_vm2, %v4943_v51 }
  0xb9   : > { %4177 = vmatmul.mubr.msk.f32.gmra.mxu0 %vm398_vm2, %v5015_v36  ;;  %v5635_v36 = vld [vmem:[%s4654_s11 + $0x198] sm:$0xff] }
  0xba   : > { %4127 = vmatmul.mubr.msk.f32.gmra.mxu1 %vm398_vm2, %v6508_v16  ;;  %4179 = vmatprep.mubr.msk.f32.mxu0 %vm398_vm2, %v5449_v50 }
  0xbb   : > { %4129 = vmatprep.mubr.msk.f32.mxu1 %vm398_vm2, %v5421_v29 }
  0xbd   : > { %4180 = vmatmul.mubr.msk.f32.gmra.mxu0 %vm398_vm2, %v5458_v62 }
  0xbe   : > { %4130 = vmatmul.mubr.msk.f32.gmra.mxu1 %vm398_vm2, %v5424_v41  ;;  %4234 = vmatprep.mubr.msk.f32.mxu0 %vm398_vm2, %v4727_v33  ;;  %v6535_v33 = vld [vmem:[#allocation41_spill] sm:$0xff] }
  0xbf   : > { %4184 = vmatprep.mubr.msk.f32.mxu1 %vm398_vm2, %v5033_v18 }
  0xc1   : > { %4235 = vmatmul.mubr.msk.f32.vlgmr.msra.gmra.mxu0 %vm398_vm2, %v4730_v34  ;;  %v6536_v34 = vld [vmem:[#allocation42_spill] sm:$0xff] }
  0xc2   : > { %4185 = vmatmul.mubr.msk.f32.vlgmr.msra.gmra.mxu1 %vm398_vm2, %v5045_v3  ;;  %4333 = vmatpush3.msk.msra.mxu0 %vm463_vm0, %v5320_v27 }
  0xc3   : > { %4283 = vmatpush3.msk.msra.mxu1 %vm463_vm0, %v5311_v57  ;;  %4187 = vmatprep.mubr.msk.f32.mxu1 %vm398_vm2, %v5058_v4  ;;  %v1931_v57 = vrot.slane %v5421_v29, 2 }
  0xc4   : > { %4237 = vmatprep.mubr.msk.f32.mxu0 %vm398_vm2, %v4767_v47  ;;  %v6537_v47 = vld [vmem:[#allocation43_spill] sm:$0xff] }
  0xc5   : > { %4238 = vmatmul.mubr.msk.f32.gmra.mxu0 %vm398_vm2, %v4770_v48  ;;  %v6538_v48 = vld [vmem:[#allocation44_spill] sm:$0xff] }
  0xc6   : > { %4188 = vmatmul.mubr.msk.f32.gmra.mxu1 %vm398_vm2, %v5075_v21  ;;  %4240 = vmatprep.mubr.msk.f32.mxu0 %vm398_vm2, %v4787_v55  ;;  %v6539_v55 = vld [vmem:[#allocation45_spill] sm:$0xff] }
  0xc7   : > { %4190 = vmatprep.mubr.msk.f32.mxu1 %vm398_vm2, %v5081_v10 }
  0xc9   : > { %4241 = vmatmul.mubr.msk.f32.gmra.mxu0 %vm398_vm2, %v4803_v61 }
  0xca   : > { %4191 = vmatmul.mubr.msk.f32.gmra.mxu1 %vm398_vm2, %v5092_v60  ;;  %4243 = vmatprep.mubr.msk.f32.mxu0 %vm398_vm2, %v4847_v25  ;;  %v6541_v25 = vld [vmem:[#allocation47_spill] sm:$0xff] }
  0xcb   : > { %4193 = vmatprep.mubr.msk.f32.mxu1 %vm398_vm2, %v5098_v49 }
  0xcd   : > { %4244 = vmatmul.mubr.msk.f32.gmra.mxu0 %vm398_vm2, %v4850_v30  ;;  %v6542_v30 = vld [vmem:[#allocation48_spill] sm:$0xff] }
  0xce   : > { %4194 = vmatmul.mubr.msk.f32.gmra.mxu1 %vm398_vm2, %v6535_v33  ;;  %4246 = vmatprep.mubr.msk.f32.mxu0 %vm398_vm2, %v4891_v59 }
  0xcf   : > { %4196 = vmatprep.mubr.msk.f32.mxu1 %vm398_vm2, %v5115_v12 }
  0xd1   : > { %4247 = vmatmul.mubr.msk.f32.gmra.mxu0 %vm398_vm2, %v4894_v1 }
  0xd2   : > { %4197 = vmatmul.mubr.msk.f32.gmra.mxu1 %vm398_vm2, %v6536_v34  ;;  %4249 = vmatprep.mubr.msk.f32.mxu0 %vm398_vm2, %v4935_v24  ;;  %v6543_v24 = vld [vmem:[#allocation49_spill] sm:$0xff] }
  0xd3   : > { %4199 = vmatprep.mubr.msk.f32.mxu1 %vm398_vm2, %v5132_v37 }
  0xd5   : > { %4250 = vmatmul.mubr.msk.f32.gmra.mxu0 %vm398_vm2, %v4938_v40  ;;  %v6544_v40 = vld [vmem:[#allocation50_spill] sm:$0xff] }
  0xd6   : > { %4200 = vmatmul.mubr.msk.f32.gmra.mxu1 %vm398_vm2, %v6537_v47  ;;  %4252 = vmatprep.mubr.msk.f32.mxu0 %vm398_vm2, %v4663_v5 }
  0xd7   : > { %4202 = vmatprep.mubr.msk.f32.mxu1 %vm398_vm2, %v5149_v28 }
  0xd9   : > { %4253 = vmatmul.mubr.msk.f32.gmra.mxu0 %vm398_vm2, %v4668_v8 }
  0xda   : > { %4203 = vmatmul.mubr.msk.f32.gmra.mxu1 %vm398_vm2, %v6538_v48  ;;  %4255 = vmatprep.mubr.msk.f32.mxu0 %vm398_vm2, %v4689_v19  ;;  %v6540_v19 = vld [vmem:[#allocation46_spill] sm:$0xff] }
  0xdb   : > { %4205 = vmatprep.mubr.msk.f32.mxu1 %vm398_vm2, %v5166_v45 }
  0xdd   : > { %4256 = vmatmul.mubr.msk.f32.gmra.mxu0 %vm398_vm2, %v4692_v20 }
  0xde   : > { %4206 = vmatmul.mubr.msk.f32.gmra.mxu1 %vm398_vm2, %v6539_v55  ;;  %4258 = vmatprep.mubr.msk.f32.mxu0 %vm398_vm2, %v4733_v35 }
  0xdf   : > { %4208 = vmatprep.mubr.msk.f32.mxu1 %vm398_vm2, %v5183_v26 }
  0xe1   : > { %v5538_v5 = vpop.f32.mrf.mxu0  ;;  %4259 = vmatmul.mubr.msk.f32.gmra.mxu0 %vm398_vm2, %v4744_v39 }
  0xe2   : > { %v5542_v8 = vpop.f32.mrf.mxu1  ;;  %4209 = vmatmul.mubr.msk.f32.gmra.mxu1 %vm398_vm2, %v6540_v19  ;;  %4261 = vmatprep.mubr.msk.f32.mxu0 %vm398_vm2, %v4781_v53 }
  0xe3   : > { %v5548_v20 = vpop.f32.mrf.mxu0  ;;  %4211 = vmatprep.mubr.msk.f32.mxu1 %vm398_vm2, %v5200_v42 }
  0xe4   : > { %v5552_v35 = vpop.f32.mrf.mxu1 }
  0xe5   : > { %v5554_v61 = vpop.f32.mrf.mxu0  ;;  %4262 = vmatmul.mubr.msk.f32.gmra.mxu0 %vm398_vm2, %v4784_v54 }
  0xe6   : > { %v5558_v39 = vpop.f32.mrf.mxu1  ;;  %4212 = vmatmul.mubr.msk.f32.gmra.mxu1 %vm398_vm2, %v6541_v25  ;;  %4264 = vmatprep.mubr.msk.f32.mxu0 %vm398_vm2, %v4820_v2 }
  0xe7   : > { %v5564_v53 = vpop.f32.mrf.mxu0  ;;  %4214 = vmatprep.mubr.msk.f32.mxu1 %vm398_vm2, %v6542_v30 }
  0xe8   : > { %v5568_v59 = vpop.f32.mrf.mxu1 }
  0xe9   : > { %v5570_v1 = vpop.f32.mrf.mxu0  ;;  %4265 = vmatmul.mubr.msk.f32.gmra.mxu0 %vm398_vm2, %v4823_v6 }
  0xea   : > { %v5574_v54 = vpop.f32.mrf.mxu1  ;;  %4215 = vmatmul.mubr.msk.f32.gmra.mxu1 %vm398_vm2, %v6543_v24  ;;  %4267 = vmatprep.mubr.msk.f32.mxu0 %vm398_vm2, %v4855_v31 }
  0xeb   : > { %v5580_v2 = vpop.f32.mrf.mxu0  ;;  %4217 = vmatprep.mubr.msk.f32.mxu1 %vm398_vm2, %v6544_v40 }
  0xec   : > { %v5584_v7 = vpop.f32.mrf.mxu1 }
  0xed   : > { %v5586_v44 = vpop.f32.mrf.mxu0  ;;  %4268 = vmatmul.mubr.msk.f32.gmra.mxu0 %vm398_vm2, %v4858_v32 }
  0xee   : > { %v5590_v6 = vpop.f32.mrf.mxu1  ;;  %4218 = vmatmul.mubr.msk.f32.gmra.mxu1 %vm398_vm2, %v6545_v22  ;;  %4270 = vmatprep.mubr.msk.f32.mxu0 %vm398_vm2, %v4899_v11 }
  0xef   : > { %v5596_v31 = vpop.f32.mrf.mxu0  ;;  %4220 = vmatprep.mubr.msk.f32.mxu1 %vm398_vm2, %v5251_v38 }
  0xf0   : > { %v5600_v18 = vpop.f32.mrf.mxu1 }
  0xf1   : > { %v5602_v3 = vpop.f32.mrf.mxu0  ;;  %4271 = vmatmul.mubr.msk.f32.gmra.mxu0 %vm398_vm2, %v6507_v0  ;;  %v1932_v0 = vrot.slane %v5424_v41, 2 }
  0xf2   : > { %v5606_v32 = vpop.f32.mrf.mxu1  ;;  %4221 = vmatmul.mubr.msk.f32.gmra.mxu1 %vm398_vm2, %v5262_v58  ;;  %4273 = vmatprep.mubr.msk.f32.mxu0 %vm398_vm2, %v4943_v51 }
  0xf3   : > { %6546 = vst [vmem:[#allocation13_spill] sm:$0xff] %v5606_v32  ;;  %v5612_v11 = vpop.f32.mrf.mxu0  ;;  %4223 = vmatprep.mubr.msk.f32.mxu1 %vm398_vm2, %v5268_v56  ;;  %v5654_v32 = vld [vmem:[%s4654_s11 + $0x1a0] sm:$0xff] }
  0xf4   : > { %v5617_v27 = vpop.f32.mrf.mxu1 }
  0xf5   : > { %6547 = vst [vmem:[#allocation15_spill] sm:$0xff] %v5617_v27  ;;  %v5620_v62 = vpop.f32.mrf.mxu0  ;;  %4274 = vmatmul.mubr.msk.f32.gmra.mxu0 %vm398_vm2, %v6508_v16  ;;  %v1934_v27 = vrot.slane %v5437_v52, 2  ;;  %v5641_v16 = vsel %vm984_vm3, %v1931_v57, %v1932_v0 }
  0xf6   : > { %v5624_v50 = vpop.f32.mrf.mxu1  ;;  %4224 = vmatmul.mubr.msk.f32.gmra.mxu1 %vm398_vm2, %v5279_v63  ;;  %4276 = vmatprep.mubr.msk.f32.mxu0 %vm398_vm2, %v5421_v29  ;;  %6550 = vst [vmem:[#allocation21_spill] sm:$0xff] %v5641_v16 }
  0xf7   : > { %6548 = vst [vmem:[#allocation17_spill] sm:$0xff] %v5624_v50  ;;  %v5630_v51 = vpop.f32.mrf.mxu0  ;;  %4226 = vmatprep.mubr.msk.f32.mxu1 %vm398_vm2, %v5285_v13  ;;  %v5661_v57 = vsel %vm984_vm3, %v1932_v0, %v1934_v27 }
  0xf8   : > { %v5638_v43 = vpop.f32.mrf.mxu1  ;;  %6552 = vst [vmem:[#allocation41_spill] sm:$0xff] %v5661_v57 }
  0xf9   : > { %6549 = vst [vmem:[#allocation19_spill] sm:$0xff] %v5638_v43  ;;  %v5643_v50 = vpop.f32.mrf.mxu0  ;;  %4277 = vmatmul.mubr.msk.f32.gmra.mxu0 %vm398_vm2, %v5424_v41 }
  0xfa   : > { %v5647_v29 = vpop.f32.mrf.mxu1  ;;  %4227 = vmatmul.mubr.msk.f32.gmra.mxu1 %vm398_vm2, %v5294_v15  ;;  %4279 = vmatprep.mubr.msk.f32.mxu0 %vm398_vm2, %v5635_v36 }
  0xfb   : > { %6551 = vst [vmem:[#allocation26_spill] sm:$0xff] %v5647_v29  ;;  %v5656_v52 = vpop.f32.mrf.mxu0  ;;  %4229 = vmatprep.mubr.msk.f32.mxu1 %vm398_vm2, %v5641_v16 }
  0xfc   : > { %v5663_v43 = vpop.f32.mrf.mxu1 }
  0xfd   : > { %6553 = vst [vmem:[#allocation42_spill] sm:$0xff] %v5663_v43  ;;  %v5665_v41 = vpop.f32.mrf.mxu0  ;;  %4280 = vmatmul.mubr.msk.f32.gmra.mxu0 %vm398_vm2, %v5654_v32 }
  0xfe   : > { %v5669_v29 = vpop.f32.mrf.mxu1  ;;  %4230 = vmatmul.mubr.msk.f32.gmra.mxu1 %vm398_vm2, %v5661_v57  ;;  %4334 = vmatprep.mubr.msk.f32.mxu0 %vm398_vm2, %v5058_v4 }
  0xff   : > { %6554 = vst [vmem:[#allocation43_spill] sm:$0xff] %v5669_v29  ;;  %v5675_v15 = vpop.f32.mrf.mxu0  ;;  %4284 = vmatprep.mubr.msk.f32.mxu1 %vm398_vm2, %v6512_v14 }
 0x100   : > { %v5679_v27 = vpop.f32.mrf.mxu1 }
 0x101   : > { %6555 = vst [vmem:[#allocation44_spill] sm:$0xff] %v5679_v27  ;;  %v4036_v0 = vpop.f32.mrf.mxu0  ;;  %4335 = vmatmul.mubr.msk.f32.vlgmr.msra.gmra.mxu0 %vm398_vm2, %v5075_v21 }
 0x102   : > { %v3986_v43 = vpop.f32.mrf.mxu1  ;;  %4285 = vmatmul.mubr.msk.f32.vlgmr.msra.gmra.mxu1 %vm398_vm2, %v6513_v17  ;;  %4337 = vmatprep.mubr.msk.f32.mxu0 %vm398_vm2, %v5081_v10 }
 0x103   : > { %v831_v4 = vadd.f32 %v3986_v43, %v5538_v5  ;;  %v1200_v29 = vpop.f32.mrf.mxu0  ;;  %4287 = vmatprep.mubr.msk.f32.mxu1 %vm398_vm2, %v6514_v23  ;;  %v6556_v23 = vld [vmem:[#allocation23_spill] sm:$0xff] }
 0x104   : > { %v825_v14 = vpop.f32.mrf.mxu1 }
 0x105   : > { %v5690_v57 = vadd.f32 %v4036_v0, %v831_v4  ;;  %v826_v27 = vadd.f32 %v825_v14, %v5548_v20  ;;  %v4039_v16 = vpop.f32.mrf.mxu0  ;;  %4338 = vmatmul.mubr.msk.f32.gmra.mxu0 %vm398_vm2, %v5092_v60  ;;  %v6558_v14 = vld [vmem:[#allocation31_spill] sm:$0xff] }
 0x106   : > { %v3989_v21 = vpop.f32.mrf.mxu1  ;;  %4288 = vmatmul.mubr.msk.f32.gmra.mxu1 %vm398_vm2, %v6515_v9  ;;  %4340 = vmatprep.mubr.msk.f32.mxu0 %vm398_vm2, %v5098_v49 }
 0x107   : > { %v5699_v43 = vadd.f32 %v1200_v29, %v826_v27  ;;  %v841_v10 = vadd.f32 %v3989_v21, %v5554_v61  ;;  %v1210_v17 = vpop.f32.mrf.mxu0  ;;  %4290 = vmatprep.mubr.msk.f32.mxu1 %vm398_vm2, %v6556_v23 }
 0x108   : > { %v835_v5 = vpop.f32.mrf.mxu1 }
 0x109   : > { %v5704_v20 = vadd.f32 %v4039_v16, %v841_v10  ;;  %v836_v60 = vadd.f32 %v835_v5, %v5564_v53  ;;  %v4042_v0 = vpop.f32.mrf.mxu0  ;;  %4341 = vmatmul.mubr.msk.f32.gmra.mxu0 %vm398_vm2, %v6535_v33  ;;  %v6557_v16 = vld [vmem:[#allocation28_spill] sm:$0xff]  ;;  %v6559_v10 = vld [vmem:[#allocation33_spill] sm:$0xff] }
 0x10a   : > { %v3992_v9 = vpop.f32.mrf.mxu1  ;;  %4291 = vmatmul.mubr.msk.f32.gmra.mxu1 %vm398_vm2, %v6517_v46  ;;  %4343 = vmatprep.mubr.msk.f32.mxu0 %vm398_vm2, %v5115_v12 }
 0x10b   : > { %v5713_v49 = vadd.f32 %v1210_v17, %v836_v60  ;;  %v851_v61 = vadd.f32 %v3992_v9, %v5570_v1  ;;  %v1220_v29 = vpop.f32.mrf.mxu0  ;;  %4293 = vmatprep.mubr.msk.f32.mxu1 %vm398_vm2, %v6557_v16  ;;  %v6560_v60 = vld [vmem:[#allocation35_spill] sm:$0xff]  ;;  %v6561_v9 = vld [vmem:[#allocation37_spill] sm:$0xff] }
 0x10c   : > { %v845_v53 = vpop.f32.mrf.mxu1 }
 0x10d   : > { %v5718_v27 = vadd.f32 %v4042_v0, %v851_v61  ;;  %v846_v33 = vadd.f32 %v845_v53, %v5580_v2  ;;  %v4045_v4 = vpop.f32.mrf.mxu0  ;;  %4344 = vmatmul.mubr.msk.f32.gmra.mxu0 %vm398_vm2, %v6536_v34  ;;  %v6562_v53 = vld [vmem:[#allocation39_spill] sm:$0xff] }
 0x10e   : > { %v3995_v46 = vpop.f32.mrf.mxu1  ;;  %4294 = vmatmul.mubr.msk.f32.gmra.mxu1 %vm398_vm2, %v6558_v14  ;;  %4346 = vmatprep.mubr.msk.f32.mxu0 %vm398_vm2, %v5132_v37 }
 0x10f   : > { %v5727_v12 = vadd.f32 %v1220_v29, %v846_v33  ;;  %v861_v1 = vadd.f32 %v3995_v46, %v5586_v44  ;;  %v1230_v21 = vpop.f32.mrf.mxu0  ;;  %4296 = vmatprep.mubr.msk.f32.mxu1 %vm398_vm2, %v6559_v10 }
 0x110   : > { %v855_v2 = vpop.f32.mrf.mxu1 }
 0x111   : > { %v5732_v17 = vadd.f32 %v4045_v4, %v861_v1  ;;  %v856_v34 = vadd.f32 %v855_v2, %v5596_v31  ;;  %v4048_v23 = vpop.f32.mrf.mxu0  ;;  %4347 = vmatmul.mubr.msk.f32.gmra.mxu0 %vm398_vm2, %v6537_v47  ;;  %v6563_v4 = vld [vmem:[#allocation9_spill] sm:$0xff]  ;;  %v6565_v2 = vld [vmem:[#allocation12_spill] sm:$0xff] }
 0x112   : > { %v3998_v5 = vpop.f32.mrf.mxu1  ;;  %4297 = vmatmul.mubr.msk.f32.gmra.mxu1 %vm398_vm2, %v6560_v60  ;;  %4349 = vmatprep.mubr.msk.f32.mxu0 %vm398_vm2, %v5149_v28  ;;  %v6566_v60 = vld [vmem:[#allocation14_spill] sm:$0xff] }
 0x113   : > { %v5741_v37 = vadd.f32 %v1230_v21, %v856_v34  ;;  %v871_v44 = vadd.f32 %v3998_v5, %v5602_v3  ;;  %v1240_v0 = vpop.f32.mrf.mxu0  ;;  %4299 = vmatprep.mubr.msk.f32.mxu1 %vm398_vm2, %v6561_v9  ;;  %v6564_v21 = vld [vmem:[#allocation10_spill] sm:$0xff] }
 0x114   : > { %v865_v31 = vpop.f32.mrf.mxu1 }
 0x115   : > { %v5746_v61 = vadd.f32 %v4048_v23, %v871_v44  ;;  %v866_v47 = vadd.f32 %v865_v31, %v5612_v11  ;;  %v4051_v29 = vpop.f32.mrf.mxu0  ;;  %4350 = vmatmul.mubr.msk.f32.gmra.mxu0 %vm398_vm2, %v6538_v48 }
 0x116   : > { %v4001_v16 = vpop.f32.mrf.mxu1  ;;  %4300 = vmatmul.mubr.msk.f32.gmra.mxu1 %vm398_vm2, %v6562_v53  ;;  %4352 = vmatprep.mubr.msk.f32.mxu0 %vm398_vm2, %v5166_v45  ;;  %v6569_v53 = vld [vmem:[#allocation20_spill] sm:$0xff] }
 0x117   : > { %v5755_v28 = vadd.f32 %v1240_v0, %v866_v47  ;;  %v881_v3 = vadd.f32 %v4001_v16, %v5620_v62  ;;  %v1250_v33 = vpop.f32.mrf.mxu0  ;;  %4302 = vmatprep.mubr.msk.f32.mxu1 %vm398_vm2, %v6563_v4  ;;  %v6567_v0 = vld [vmem:[#allocation16_spill] sm:$0xff] }
 0x118   : > { %v875_v11 = vpop.f32.mrf.mxu1 }
 0x119   : > { %v5760_v46 = vadd.f32 %v4051_v29, %v881_v3  ;;  %v876_v48 = vadd.f32 %v875_v11, %v5630_v51  ;;  %v4054_v14 = vpop.f32.mrf.mxu0  ;;  %4353 = vmatmul.mubr.msk.f32.gmra.mxu0 %vm398_vm2, %v6539_v55  ;;  %v6568_v29 = vld [vmem:[#allocation18_spill] sm:$0xff] }
 0x11a   : > { %v4004_v1 = vpop.f32.mrf.mxu1  ;;  %4303 = vmatmul.mubr.msk.f32.gmra.mxu1 %vm398_vm2, %v6564_v21  ;;  %4355 = vmatprep.mubr.msk.f32.mxu0 %vm398_vm2, %v5183_v26  ;;  %v6570_v11 = vld [vmem:[#allocation22_spill] sm:$0xff] }
 0x11b   : > { %v5769_v62 = vadd.f32 %v1250_v33, %v876_v48  ;;  %v891_v45 = vadd.f32 %v4004_v1, %v5643_v50  ;;  %v1260_v10 = vpop.f32.mrf.mxu0  ;;  %4305 = vmatprep.mubr.msk.f32.mxu1 %vm398_vm2, %v6565_v2 }
 0x11c   : > { %v885_v51 = vpop.f32.mrf.mxu1 }
 0x11d   : > { %v5774_v34 = vadd.f32 %v4054_v14, %v891_v45  ;;  %v886_v55 = vadd.f32 %v885_v51, %v5656_v52  ;;  %v4057_v23 = vpop.f32.mrf.mxu0  ;;  %4356 = vmatmul.mubr.msk.f32.gmra.mxu0 %vm398_vm2, %v6540_v19  ;;  %v6571_v14 = vld [vmem:[#allocation24_spill] sm:$0xff]  ;;  %v6573_v51 = vld [vmem:[#allocation29_spill] sm:$0xff] }
 0x11e   : > { %v4007_v5 = vpop.f32.mrf.mxu1  ;;  %4306 = vmatmul.mubr.msk.f32.gmra.mxu1 %vm398_vm2, %v6566_v60  ;;  %4358 = vmatprep.mubr.msk.f32.mxu0 %vm398_vm2, %v5200_v42  ;;  %v6574_v60 = vld [vmem:[#allocation32_spill] sm:$0xff] }
 0x11f   : > { %v5783_v26 = vadd.f32 %v1260_v10, %v886_v55  ;;  %v901_v50 = vadd.f32 %v4007_v5, %v5665_v41  ;;  %v1270_v44 = vpop.f32.mrf.mxu0  ;;  %4308 = vmatprep.mubr.msk.f32.mxu1 %vm398_vm2, %v6567_v0  ;;  %v6572_v10 = vld [vmem:[#allocation27_spill] sm:$0xff] }
 0x120   : > { %v895_v52 = vpop.f32.mrf.mxu1 }
 0x121   : > { %v5788_v9 = vadd.f32 %v4057_v23, %v901_v50  ;;  %v896_v19 = vadd.f32 %v895_v52, %v5675_v15  ;;  %v4060_v31 = vpop.f32.mrf.mxu0  ;;  %4359 = vmatmul.mubr.msk.f32.gmra.mxu0 %vm398_vm2, %v6541_v25 }
 0x122   : > { %v4010_v47 = vpop.f32.mrf.mxu1  ;;  %4309 = vmatmul.mubr.msk.f32.gmra.mxu1 %vm398_vm2, %v6568_v29  ;;  %4361 = vmatprep.mubr.msk.f32.mxu0 %vm398_vm2, %v6542_v30  ;;  %v6577_v29 = vld [vmem:[#allocation13_spill] sm:$0xff] }
 0x123   : > { %v5797_v42 = vadd.f32 %v1270_v44, %v896_v19  ;;  %v911_v41 = vadd.f32 %v4010_v47, %v5542_v8  ;;  %v1280_v16 = vpop.f32.mrf.mxu0  ;;  %4311 = vmatprep.mubr.msk.f32.mxu1 %vm398_vm2, %v6569_v53  ;;  %v6575_v44 = vld [vmem:[#allocation34_spill] sm:$0xff]  ;;  %v2471_v53 = vrot.slane %v5635_v36, 1 }
 0x124   : > { %v905_v15 = vpop.f32.mrf.mxu1 }
 0x125   : > { %v5802_v3 = vadd.f32 %v4060_v31, %v911_v41  ;;  %v906_v25 = vadd.f32 %v905_v15, %v5552_v35  ;;  %v4063_v33 = vpop.f32.mrf.mxu0  ;;  %4362 = vmatmul.mubr.msk.f32.gmra.mxu0 %vm398_vm2, %v6543_v24  ;;  %v2743_v31 = vrot.slane %v5654_v32, 2  ;;  %v2472_v15 = vrot.slane %v5654_v32, 1  ;;  %v6583_v32 = vld [vmem:[#allocation17_spill] sm:$0xff] }
 0x126   : > { %v4013_v4 = vpop.f32.mrf.mxu1  ;;  %4312 = vmatmul.mubr.msk.f32.gmra.mxu1 %vm398_vm2, %v6570_v11  ;;  %4364 = vmatprep.mubr.msk.f32.mxu0 %vm398_vm2, %v6544_v40 }
 0x127   : > { %v5811_v8 = vadd.f32 %v1280_v16, %v906_v25  ;;  %v921_v30 = vadd.f32 %v4013_v4, %v5558_v39  ;;  %v1290_v48 = vpop.f32.mrf.mxu0  ;;  %4314 = vmatprep.mubr.msk.f32.mxu1 %vm398_vm2, %v6571_v14  ;;  %v6578_v16 = vld [vmem:[#allocation38_spill] sm:$0xff]  ;;  %v6581_v14 = vld [vmem:[#allocation40_spill] sm:$0xff] }
 0x128   : > { %v915_v35 = vpop.f32.mrf.mxu1 }
 0x129   : > { %v5816_v1 = vadd.f32 %v4063_v33, %v921_v30  ;;  %v916_v24 = vadd.f32 %v915_v35, %v5568_v59  ;;  %v4066_v21 = vpop.f32.mrf.mxu0  ;;  %4365 = vmatmul.mubr.msk.f32.gmra.mxu0 %vm398_vm2, %v6545_v22  ;;  %v6580_v30 = vld [vmem:[#allocation25_spill] sm:$0xff] }
 0x12a   : > { %v4016_v45 = vpop.f32.mrf.mxu1  ;;  %4315 = vmatmul.mubr.msk.f32.gmra.mxu1 %vm398_vm2, %v6572_v10  ;;  %4367 = vmatprep.mubr.msk.f32.mxu0 %vm398_vm2, %v5251_v38  ;;  %v6582_v35 = vld [vmem:[#allocation21_spill] sm:$0xff]  ;;  %v6584_v10 = vld [vmem:[#allocation30_spill] sm:$0xff] }
 0x12b   : > { %v5825_v39 = vadd.f32 %v1290_v48, %v916_v24  ;;  %v931_v40 = vadd.f32 %v4016_v45, %v5574_v54  ;;  %v1300_v2 = vpop.f32.mrf.mxu0  ;;  %4317 = vmatprep.mubr.msk.f32.mxu1 %vm398_vm2, %v6573_v51 }
 0x12c   : > { %v925_v59 = vpop.f32.mrf.mxu1 }
 0x12d   : > { %v5830_v55 = vadd.f32 %v4066_v21, %v931_v40  ;;  %v926_v22 = vadd.f32 %v925_v59, %v5584_v7  ;;  %v4069_v23 = vpop.f32.mrf.mxu0  ;;  %4368 = vmatmul.mubr.msk.f32.gmra.mxu0 %vm398_vm2, %v5262_v58  ;;  %v2473_v59 = vsel %vm315_vm1, %v2471_v53, %v2472_v15 }
 0x12e   : > { %v4019_v5 = vpop.f32.mrf.mxu1  ;;  %4318 = vmatmul.mubr.msk.f32.gmra.mxu1 %vm398_vm2, %v6574_v60  ;;  %4370 = vmatprep.mubr.msk.f32.mxu0 %vm398_vm2, %v5268_v56  ;;  %v6576_v56 = vld [vmem:[#allocation36_spill] sm:$0xff] }
 0x12f   : > { %v5839_v38 = vadd.f32 %v1300_v2, %v926_v22  ;;  %v941_v54 = vadd.f32 %v4019_v5, %v5590_v6  ;;  %v1310_v50 = vpop.f32.mrf.mxu0  ;;  %4320 = vmatprep.mubr.msk.f32.mxu1 %vm398_vm2, %v6575_v44  ;;  %v2742_v6 = vrot.slane %v5635_v36, 2  ;;  %v6587_v44 = vld [vmem:[#allocation11_spill] sm:$0xff] }
 0x130   : > { %v935_v7 = vpop.f32.mrf.mxu1 }
 0x131   : > { %v5844_v0 = vadd.f32 %v4069_v23, %v941_v54  ;;  %v936_v58 = vadd.f32 %v935_v7, %v5600_v18  ;;  %v4072_v52 = vpop.f32.mrf.mxu0  ;;  %4371 = vmatmul.mubr.msk.f32.gmra.mxu0 %vm398_vm2, %v5279_v63  ;;  %v265_v63 = vld [vmem:[%s4654_s11 + $0x1a8] sm:$0x3]  ;;  %v2744_v40 = vsel %vm984_vm3, %v2742_v6, %v2743_v31  ;;  %v6585_v23 = vld [vmem:[#allocation19_spill] sm:$0xff]  ;;  %s3634_s11 = sshll.u32 %s4605_s19, 12 }
 0x132   : > { %v4022_v19 = vpop.f32.mrf.mxu1  ;;  %4321 = vmatmul.mubr.msk.f32.gmra.mxu1 %vm398_vm2, %v6576_v56  ;;  %4373 = vmatprep.mubr.msk.f32.mxu0 %vm398_vm2, %v5285_v13  ;;  %v6579_v13 = vld [vmem:[#allocation15_spill] sm:$0xff]  ;;  %v2745_v24 = vrot.slane %v265_v63, 2  ;;  %v2474_v2 = vrot.slane %v265_v63, 1  ;;  %v6586_v54 = vld [vmem:[#allocation41_spill] sm:$0xff]  ;;  %s6261_s22 = scalar_lea.hbm %s6377_s2, %s3634_s11 }
 0x133   : > { %v5855_v47 = vadd.f32 %v1310_v50, %v936_v58  ;;  %v951_v41 = vadd.f32 %v4022_v19, %v6577_v29  ;;  %v1320_v18 = vpop.f32.mrf.mxu0  ;;  %4323 = vmatprep.mubr.msk.f32.mxu1 %vm398_vm2, %v6578_v16 }
 0x134   : > { %v945_v25 = vpop.f32.mrf.mxu1  ;;  %v2746_v7 = vsel %vm984_vm3, %v2743_v31, %v2745_v24  ;;  %v2475_v6 = vsel %vm315_vm1, %v2472_v15, %v2474_v2  ;;  %v6591_v15 = vld [vmem:[#allocation44_spill] sm:$0xff] }
 0x135   : > { %v5863_v33 = vadd.f32 %v4072_v52, %v951_v41  ;;  %v946_v4 = vadd.f32 %v945_v25, %v6579_v13  ;;  %v4075_v11 = vpop.f32.mrf.mxu0  ;;  %4374 = vmatmul.mubr.msk.f32.gmra.mxu0 %vm398_vm2, %v6580_v30  ;;  %v6588_v52 = vld [vmem:[#allocation26_spill] sm:$0xff]  ;;  %v6590_v25 = vld [vmem:[#allocation43_spill] sm:$0xff] }
 0x136   : > { %v4025_v48 = vpop.f32.mrf.mxu1  ;;  %4324 = vmatmul.mubr.msk.f32.gmra.mxu1 %vm398_vm2, %v6581_v14  ;;  %4376 = vmatprep.mubr.msk.f32.mxu0 %vm398_vm2, %v6582_v35 }
 0x137   : > { %v5872_v36 = vadd.f32 %v1320_v18, %v946_v4  ;;  %v961_v21 = vadd.f32 %v4025_v48, %v6583_v32  ;;  %v1330_v45 = vpop.f32.mrf.mxu0  ;;  %4326 = vmatprep.mubr.msk.f32.mxu1 %vm398_vm2, %v6584_v10  ;;  %v6589_v18 = vld [vmem:[#allocation42_spill] sm:$0xff] }
 0x138   : > { %v955_v51 = vpop.f32.mrf.mxu1 }
 0x139   : > { %v5879_v22 = vadd.f32 %v4075_v11, %v961_v21  ;;  %v956_v5 = vadd.f32 %v955_v51, %v6585_v23  ;;  %v4078_v60 = vpop.f32.mrf.mxu0  ;;  %4377 = vmatmul.mubr.msk.f32.gmra.mxu0 %vm398_vm2, %v6586_v54 }
 0x13a   : > { %v4028_v50 = vpop.f32.mrf.mxu1  ;;  %4327 = vmatmul.mubr.msk.f32.gmra.mxu1 %vm398_vm2, %v6587_v44  ;;  %4379 = vmatprep.mubr.msk.f32.mxu0 %vm398_vm2, %v2744_v40 }
 0x13b   : > { %v5888_v58 = vadd.f32 %v1330_v45, %v956_v5  ;;  %v971_v19 = vadd.f32 %v4028_v50, %v6588_v52  ;;  %v1340_v56 = vpop.f32.mrf.mxu0  ;;  %4329 = vmatprep.mubr.msk.f32.mxu1 %vm398_vm2, %v2473_v59 }
 0x13c   : > { %v965_v29 = vpop.f32.mrf.mxu1 }
 0x13d   : > { %v5893_v41 = vadd.f32 %v4078_v60, %v971_v19  ;;  %v966_v16 = vadd.f32 %v965_v29, %v6589_v18  ;;  %v4081_v63 = vpop.f32.mrf.mxu0  ;;  %4380 = vmatmul.mubr.msk.f32.gmra.mxu0 %vm398_vm2, %v2746_v7 }
 0x13e   : > { %v4031_v53 = vpop.f32.mrf.mxu1  ;;  %4330 = vmatmul.mubr.msk.f32.gmra.mxu1 %vm398_vm2, %v2475_v6 }
 0x13f   : > { %v5898_v31 = vadd.f32 %v1340_v56, %v966_v16  ;;  %v981_v13 = vadd.f32 %v4031_v53, %v6590_v25  ;;  %v1350_v4 = vpop.f32.mrf.mxu0 }
 0x140   : > { %v975_v11 = vpop.f32.mrf.mxu1 }
 0x141   : > { %v5901_v30 = vadd.f32 %v4081_v63, %v981_v13  ;;  %v976_v48 = vadd.f32 %v975_v11, %v6591_v15  ;;  %v4136_v14 = vpop.f32.mrf.mxu0 }
 0x142   : > { %v4086_v35 = vpop.f32.mrf.mxu1 }
 0x143   : > { %v5904_v24 = vadd.f32 %v1350_v4, %v976_v48  ;;  %v1628_v32 = vadd.f32 %v4086_v35, %v5690_v57  ;;  %v1740_v21 = vpop.f32.mrf.mxu0 }
 0x144   : > { %v1468_v45 = vpop.f32.mrf.mxu1 }
 0x145   : > { %v5907_v10 = vadd.f32 %v4136_v14, %v1628_v32  ;;  %v1627_v40 = vadd.f32 %v1468_v45, %v5699_v43  ;;  %v4139_v2 = vpop.f32.mrf.mxu0 }
 0x146   : > { %v4089_v51 = vpop.f32.mrf.mxu1 }
 0x147   : > { %v5910_v59 = vadd.f32 %v1740_v21, %v1627_v40  ;;  %v1630_v23 = vadd.f32 %v4089_v51, %v5704_v20  ;;  %v1750_v5 = vpop.f32.mrf.mxu0 }
 0x148   : > { %v1478_v60 = vpop.f32.mrf.mxu1 }
 0x149   : > { %v5913_v54 = vadd.f32 %v4139_v2, %v1630_v23  ;;  %v1629_v50 = vadd.f32 %v1478_v60, %v5713_v49  ;;  %v4142_v44 = vpop.f32.mrf.mxu0 }
 0x14a   : > { %v4092_v57 = vpop.f32.mrf.mxu1 }
 0x14b   : > { %v5916_v7 = vadd.f32 %v1750_v5, %v1629_v50  ;;  %v1632_v52 = vadd.f32 %v4092_v57, %v5718_v27  ;;  %v1760_v19 = vpop.f32.mrf.mxu0 }
 0x14c   : > { %v1488_v43 = vpop.f32.mrf.mxu1 }
 0x14d   : > { %v5919_v56 = vadd.f32 %v4142_v44, %v1632_v52  ;;  %v1631_v6 = vadd.f32 %v1488_v43, %v5727_v12  ;;  %v4145_v29 = vpop.f32.mrf.mxu0 }
 0x14e   : > { %v4095_v20 = vpop.f32.mrf.mxu1 }
 0x14f   : > { %v5922_v18 = vadd.f32 %v1760_v19, %v1631_v6  ;;  %v1634_v16 = vadd.f32 %v4095_v20, %v5732_v17  ;;  %v1770_v63 = vpop.f32.mrf.mxu0 }
 0x150   : > { %v1498_v49 = vpop.f32.mrf.mxu1 }
 0x151   : > { %v5925_v53 = vadd.f32 %v4145_v29, %v1634_v16  ;;  %v1633_v25 = vadd.f32 %v1498_v49, %v5741_v37  ;;  %v4148_v13 = vpop.f32.mrf.mxu0 }
 0x152   : > { %v4098_v27 = vpop.f32.mrf.mxu1 }
 0x153   : > { %v5928_v4 = vadd.f32 %v1770_v63, %v1633_v25  ;;  %v1636_v11 = vadd.f32 %v4098_v27, %v5746_v61  ;;  %v1780_v15 = vpop.f32.mrf.mxu0 }
 0x154   : > { %v1508_v12 = vpop.f32.mrf.mxu1 }
 0x155   : > { %v5931_v48 = vadd.f32 %v4148_v13, %v1636_v11  ;;  %v1635_v14 = vadd.f32 %v1508_v12, %v5755_v28  ;;  %v4151_v35 = vpop.f32.mrf.mxu0 }
 0x156   : > { %v4101_v17 = vpop.f32.mrf.mxu1 }
 0x157   : > { %v5934_v32 = vadd.f32 %v1780_v15, %v1635_v14  ;;  %v1638_v21 = vadd.f32 %v4101_v17, %v5760_v46  ;;  %v1790_v45 = vpop.f32.mrf.mxu0 }
 0x158   : > { %v1518_v37 = vpop.f32.mrf.mxu1 }
 0x159   : > { %v5937_v40 = vadd.f32 %v4151_v35, %v1638_v21  ;;  %v1637_v2 = vadd.f32 %v1518_v37, %v5769_v62  ;;  %v4154_v51 = vpop.f32.mrf.mxu0 }
 0x15a   : > { %v4104_v61 = vpop.f32.mrf.mxu1 }
 0x15b   : > { %v5940_v23 = vadd.f32 %v1790_v45, %v1637_v2  ;;  %v1640_v5 = vadd.f32 %v4104_v61, %v5774_v34  ;;  %v1800_v60 = vpop.f32.mrf.mxu0 }
 0x15c   : > { %v1528_v28 = vpop.f32.mrf.mxu1 }
 0x15d   : > { %v5943_v50 = vadd.f32 %v4154_v51, %v1640_v5  ;;  %v1639_v44 = vadd.f32 %v1528_v28, %v5783_v26  ;;  %v4157_v57 = vpop.f32.mrf.mxu0 }
 0x15e   : > { %v4107_v46 = vpop.f32.mrf.mxu1 }
 0x15f   : > { %v5946_v52 = vadd.f32 %v1800_v60, %v1639_v44  ;;  %v1642_v19 = vadd.f32 %v4107_v46, %v5788_v9  ;;  %v1810_v43 = vpop.f32.mrf.mxu0 }
 0x160   : > { %v1538_v62 = vpop.f32.mrf.mxu1 }
 0x161   : > { %v5949_v6 = vadd.f32 %v4157_v57, %v1642_v19  ;;  %v1641_v29 = vadd.f32 %v1538_v62, %v5797_v42  ;;  %v4160_v20 = vpop.f32.mrf.mxu0 }
 0x162   : > { %v4110_v34 = vpop.f32.mrf.mxu1 }
 0x163   : > { %v5952_v16 = vadd.f32 %v1810_v43, %v1641_v29  ;;  %v1644_v63 = vadd.f32 %v4110_v34, %v5802_v3  ;;  %v1820_v49 = vpop.f32.mrf.mxu0 }
 0x164   : > { %v1548_v26 = vpop.f32.mrf.mxu1 }
 0x165   : > { %v5955_v25 = vadd.f32 %v4160_v20, %v1644_v63  ;;  %v1643_v13 = vadd.f32 %v1548_v26, %v5811_v8  ;;  %v4163_v27 = vpop.f32.mrf.mxu0 }
 0x166   : > { %v4113_v9 = vpop.f32.mrf.mxu1 }
 0x167   : > { %v5958_v11 = vadd.f32 %v1820_v49, %v1643_v13  ;;  %v1646_v15 = vadd.f32 %v4113_v9, %v5816_v1  ;;  %v1830_v12 = vpop.f32.mrf.mxu0 }
 0x168   : > { %v1558_v42 = vpop.f32.mrf.mxu1 }
 0x169   : > { %v5961_v14 = vadd.f32 %v4163_v27, %v1646_v15  ;;  %v1645_v35 = vadd.f32 %v1558_v42, %v5825_v39  ;;  %v4166_v17 = vpop.f32.mrf.mxu0 }
 0x16a   : > { %v4116_v3 = vpop.f32.mrf.mxu1 }
 0x16b   : > { %6592 = vst [vmem:[#allocation45_spill] sm:$0xff] %v5961_v14  ;;  %v5964_v21 = vadd.f32 %v1830_v12, %v1645_v35  ;;  %v1648_v45 = vadd.f32 %v4116_v3, %v5830_v55  ;;  %v1840_v37 = vpop.f32.mrf.mxu0 }
 0x16c   : > { %v1568_v8 = vpop.f32.mrf.mxu1 }
 0x16d   : > { %6593 = vst [vmem:[#allocation46_spill] sm:$0xff] %v5964_v21  ;;  %v5967_v2 = vadd.f32 %v4166_v17, %v1648_v45  ;;  %v1647_v51 = vadd.f32 %v1568_v8, %v5839_v38  ;;  %v4169_v61 = vpop.f32.mrf.mxu0 }
 0x16e   : > { %v4119_v1 = vpop.f32.mrf.mxu1 }
 0x16f   : > { %6594 = vst [vmem:[#allocation47_spill] sm:$0xff] %v5967_v2  ;;  %v5970_v5 = vadd.f32 %v1840_v37, %v1647_v51  ;;  %v1650_v60 = vadd.f32 %v4119_v1, %v5844_v0  ;;  %v1850_v28 = vpop.f32.mrf.mxu0 }
 0x170   : > { %v1578_v39 = vpop.f32.mrf.mxu1 }
 0x171   : > { %6595 = vst [vmem:[#allocation48_spill] sm:$0xff] %v5970_v5  ;;  %v5973_v44 = vadd.f32 %v4169_v61, %v1650_v60  ;;  %v1649_v57 = vadd.f32 %v1578_v39, %v5855_v47  ;;  %v4172_v46 = vpop.f32.mrf.mxu0 }
 0x172   : > { %v4122_v55 = vpop.f32.mrf.mxu1 }
 0x173   : > { %6596 = vst [vmem:[#allocation49_spill] sm:$0xff] %v5973_v44  ;;  %v5976_v19 = vadd.f32 %v1850_v28, %v1649_v57  ;;  %v1652_v43 = vadd.f32 %v4122_v55, %v5863_v33  ;;  %v1860_v62 = vpop.f32.mrf.mxu0 }
 0x174   : > { %v1588_v38 = vpop.f32.mrf.mxu1 }
 0x175   : > { %6597 = vst [vmem:[#allocation50_spill] sm:$0xff] %v5976_v19  ;;  %v5979_v29 = vadd.f32 %v4172_v46, %v1652_v43  ;;  %v1651_v20 = vadd.f32 %v1588_v38, %v5872_v36  ;;  %v4175_v34 = vpop.f32.mrf.mxu0 }
 0x176   : > { %v4125_v0 = vpop.f32.mrf.mxu1 }
 0x177   : > { %6598 = vst [vmem:[#allocation51_spill] sm:$0xff] %v5979_v29  ;;  %v5982_v63 = vadd.f32 %v1860_v62, %v1651_v20  ;;  %v1654_v49 = vadd.f32 %v4125_v0, %v5879_v22  ;;  %v1870_v26 = vpop.f32.mrf.mxu0 }
 0x178   : > { %v1598_v47 = vpop.f32.mrf.mxu1 }
 0x179   : > { %6599 = vst [vmem:[#allocation23_spill] sm:$0xff] %v5982_v63  ;;  %v5985_v13 = vadd.f32 %v4175_v34, %v1654_v49  ;;  %v1653_v27 = vadd.f32 %v1598_v47, %v5888_v58  ;;  %v4178_v9 = vpop.f32.mrf.mxu0 }
 0x17a   : > { %v4128_v33 = vpop.f32.mrf.mxu1 }
 0x17b   : > { %6600 = vst [vmem:[#allocation28_spill] sm:$0xff] %v5985_v13  ;;  %v5988_v15 = vadd.f32 %v1870_v26, %v1653_v27  ;;  %v1656_v12 = vadd.f32 %v4128_v33, %v5893_v41  ;;  %v1880_v42 = vpop.f32.mrf.mxu0 }
 0x17c   : > { %v1608_v36 = vpop.f32.mrf.mxu1 }
 0x17d   : > { %6601 = vst [vmem:[#allocation31_spill] sm:$0xff] %v5988_v15  ;;  %v5991_v35 = vadd.f32 %v4178_v9, %v1656_v12  ;;  %v1655_v17 = vadd.f32 %v1608_v36, %v5898_v31  ;;  %v4181_v3 = vpop.f32.mrf.mxu0 }
 0x17e   : > { %v4131_v22 = vpop.f32.mrf.mxu1 }
 0x17f   : > { %6602 = vst [vmem:[#allocation33_spill] sm:$0xff] %v5991_v35  ;;  %v5994_v45 = vadd.f32 %v1880_v42, %v1655_v17  ;;  %v1658_v37 = vadd.f32 %v4131_v22, %v5901_v30  ;;  %v1890_v8 = vpop.f32.mrf.mxu0 }
 0x180   : > { %v1618_v58 = vpop.f32.mrf.mxu1 }
 0x181   : > { %6603 = vst [vmem:[#allocation35_spill] sm:$0xff] %v5994_v45  ;;  %v5997_v51 = vadd.f32 %v4181_v3, %v1658_v37  ;;  %v1657_v61 = vadd.f32 %v1618_v58, %v5904_v24  ;;  %v6000_v1 = vpop.f32.mrf.mxu0 }
 0x182   : > { %v4186_v41 = vpop.f32.mrf.mxu1 }
 0x183   : > { %6604 = vst [vmem:[#allocation37_spill] sm:$0xff] %v5997_v51  ;;  %v6002_v60 = vadd.f32 %v1890_v8, %v1657_v61  ;;  %v6004_v28 = vpop.f32.mrf.mxu0 }
 0x184   : > { %v2011_v31 = vpop.f32.mrf.mxu1 }
 0x185   : > { %6605 = vst [vmem:[#allocation39_spill] sm:$0xff] %v6002_v60  ;;  %v6006_v39 = vpop.f32.mrf.mxu0 }
 0x186   : > { %v6008_v57 = vpop.f32.mrf.mxu1 }
 0x187   : > { %v6010_v46 = vpop.f32.mrf.mxu0 }
 0x188   : > { %v6012_v30 = vpop.f32.mrf.mxu1 }
 0x189   : > { %v6014_v55 = vpop.f32.mrf.mxu0 }
 0x18a   : > { %v6016_v43 = vpop.f32.mrf.mxu1 }
 0x18b   : > { %v6018_v24 = vpop.f32.mrf.mxu0 }
 0x18c   : > { %v6020_v62 = vpop.f32.mrf.mxu1 }
 0x18d   : > { %v6022_v38 = vpop.f32.mrf.mxu0 }
 0x18e   : > { %v6024_v20 = vpop.f32.mrf.mxu1 }
 0x18f   : > { %v6026_v34 = vpop.f32.mrf.mxu0 }
 0x190   : > { %v6028_v0 = vpop.f32.mrf.mxu1 }
 0x191   : > { %v6030_v49 = vpop.f32.mrf.mxu0 }
 0x192   : > { %v6032_v26 = vpop.f32.mrf.mxu1 }
 0x193   : > { %v6034_v47 = vpop.f32.mrf.mxu0 }
 0x194   : > { %v6036_v27 = vpop.f32.mrf.mxu1 }
 0x195   : > { %v6038_v9 = vpop.f32.mrf.mxu0 }
 0x196   : > { %v6040_v33 = vpop.f32.mrf.mxu1 }
 0x197   : > { %v6042_v12 = vpop.f32.mrf.mxu0 }
 0x198   : > { %v6044_v42 = vpop.f32.mrf.mxu1 }
 0x199   : > { %v6046_v36 = vpop.f32.mrf.mxu0 }
 0x19a   : > { %v6048_v17 = vpop.f32.mrf.mxu1 }
 0x19b   : > { %v6050_v3 = vpop.f32.mrf.mxu0 }
 0x19c   : > { %v6052_v22 = vpop.f32.mrf.mxu1 }
 0x19d   : > { %v6054_v37 = vpop.f32.mrf.mxu0 }
 0x19e   : > { %v6056_v8 = vpop.f32.mrf.mxu1 }
 0x19f   : > { %v6058_v58 = vpop.f32.mrf.mxu0 }
 0x1a0   : > { %v6060_v61 = vpop.f32.mrf.mxu1 }
 0x1a1   : > { %v6062_v60 = vpop.f32.mrf.mxu0 }
 0x1a2   : > { %v6064_v51 = vpop.f32.mrf.mxu1 }
 0x1a3   : > { %v6066_v45 = vpop.f32.mrf.mxu0 }
 0x1a4   : > { %6606 = vst [vmem:[#allocation9_spill] sm:$0xff] %v6066_v45  ;;  %v6068_v35 = vpop.f32.mrf.mxu1 }
 0x1a5   : > { %v6070_v15 = vpop.f32.mrf.mxu0 }
 0x1a6   : > { %6607 = vst [vmem:[#allocation10_spill] sm:$0xff] %v6070_v15  ;;  %v6072_v13 = vpop.f32.mrf.mxu1 }
 0x1a7   : > { %6608 = vst [vmem:[#allocation12_spill] sm:$0xff] %v6072_v13  ;;  %v6074_v63 = vpop.f32.mrf.mxu0 }
 0x1a8   : > { %6609 = vst [vmem:[#allocation14_spill] sm:$0xff] %v6074_v63  ;;  %v6076_v29 = vpop.f32.mrf.mxu1 }
 0x1a9   : > { %6610 = vst [vmem:[#allocation16_spill] sm:$0xff] %v6076_v29  ;;  %v6078_v19 = vpop.f32.mrf.mxu0 }
 0x1aa   : > { %6611 = vst [vmem:[#allocation18_spill] sm:$0xff] %v6078_v19  ;;  %v6080_v44 = vpop.f32.mrf.mxu1 }
 0x1ab   : > { %6612 = vst [vmem:[#allocation20_spill] sm:$0xff] %v6080_v44  ;;  %v6082_v5 = vpop.f32.mrf.mxu0 }
 0x1ac   : > { %6613 = vst [vmem:[#allocation22_spill] sm:$0xff] %v6082_v5  ;;  %v6084_v2 = vpop.f32.mrf.mxu1 }
 0x1ad   : > { %6614 = vst [vmem:[#allocation24_spill] sm:$0xff] %v6084_v2  ;;  %v6086_v21 = vpop.f32.mrf.mxu0 }
 0x1ae   : > { %6615 = vst [vmem:[#allocation27_spill] sm:$0xff] %v6086_v21  ;;  %v6088_v45 = vpop.f32.mrf.mxu1 }
 0x1af   : > { %6616 = vst [vmem:[#allocation29_spill] sm:$0xff] %v6088_v45  ;;  %v6090_v14 = vpop.f32.mrf.mxu0 }
 0x1b0   : > { %6617 = vst [vmem:[#allocation32_spill] sm:$0xff] %v6090_v14  ;;  %v6092_v15 = vpop.f32.mrf.mxu1 }
 0x1b1   : > { %6618 = vst [vmem:[#allocation34_spill] sm:$0xff] %v6092_v15  ;;  %v6094_v63 = vpop.f32.mrf.mxu0 }
 0x1b2   : > { %6619 = vst [vmem:[#allocation36_spill] sm:$0xff] %v6094_v63  ;;  %v6096_v29 = vpop.f32.mrf.mxu1 }
 0x1b3   : > { %6620 = vst [vmem:[#allocation13_spill] sm:$0xff] %v6096_v29  ;;  %v6098_v19 = vpop.f32.mrf.mxu0 }
 0x1b4   : > { %6621 = vst [vmem:[#allocation38_spill] sm:$0xff] %v6098_v19  ;;  %v6100_v44 = vpop.f32.mrf.mxu1  ;;  %v2171_v19 = vadd.f32 %v4186_v41, %v5907_v10 }
 0x1b5   : > { %6622 = vst [vmem:[#allocation15_spill] sm:$0xff] %v6100_v44  ;;  %v6102_v5 = vpop.f32.mrf.mxu0 }
 0x1b6   : > { %6623 = vst [vmem:[#allocation25_spill] sm:$0xff] %v6102_v5  ;;  %v6104_v2 = vpop.f32.mrf.mxu1 }
 0x1b7   : > { %v6106_v21 = vpop.f32.mrf.mxu0 }
 0x1b8   : > { %6624 = vst [vmem:[#allocation40_spill] sm:$0xff] %v6106_v21  ;;  %v6108_v45 = vpop.f32.mrf.mxu1  ;;  %v2170_v21 = vadd.f32 %v2011_v31, %v5910_v59  ;;  %v2175_v59 = vadd.f32 %v6016_v43, %v5919_v56 }
 0x1b9   : > { %6625 = vst [vmem:[#allocation21_spill] sm:$0xff] %v6108_v45  ;;  %v6110_v14 = vpop.f32.mrf.mxu0 }
 0x1ba   : > { %6626 = vst [vmem:[#allocation17_spill] sm:$0xff] %v6110_v14  ;;  %v6112_v15 = vpop.f32.mrf.mxu1 }
 0x1bb   : > { %6627 = vst [vmem:[#allocation30_spill] sm:$0xff] %v6112_v15  ;;  %v6114_v13 = vpop.f32.mrf.mxu0  ;;  %v2439_v15 = vadd.f32 %v6000_v1, %v2171_v19 }
 0x1bc   : > { %6628 = vst [vmem:[#allocation19_spill] sm:$0xff] %v6114_v13  ;;  %v6116_v63 = vpop.f32.mrf.mxu1  ;;  %v2173_v13 = vadd.f32 %v6008_v57, %v5913_v54 }
 0x1bd   : > { %6629 = vst [vmem:[#allocation41_spill] sm:$0xff] %v6116_v63  ;;  %v6119_v29 = vpop.f32.mrf.mxu0 }
 0x1be   : > { %6630 = vst [vmem:[#allocation11_spill] sm:$0xff] %v6119_v29  ;;  %v6121_v44 = vpop.f32.mrf.mxu1  ;;  %v2438_v29 = vadd.f32 %v6004_v28, %v2170_v21  ;;  %v2174_v21 = vadd.f32 %v6020_v62, %v5922_v18 }
 0x1bf   : > { %6631 = vst [vmem:[#allocation26_spill] sm:$0xff] %v6121_v44  ;;  %v6127_v5 = vpop.f32.mrf.mxu0  ;;  %v2172_v44 = vadd.f32 %v6012_v30, %v5916_v7  ;;  %v2177_v30 = vadd.f32 %v6024_v20, %v5925_v53 }
 0x1c0   : > { %6632 = vst [vmem:[#allocation42_spill] sm:$0xff] %v6127_v5  ;;  %v6129_v14 = vpop.f32.mrf.mxu1  ;;  %v2441_v5 = vadd.f32 %v6006_v39, %v2173_v13  ;;  %v2443_v13 = vadd.f32 %v6014_v55, %v2175_v59  ;;  %v2442_v43 = vadd.f32 %v6018_v24, %v2174_v21 }
 0x1c1   : > { %6633 = vst [vmem:[#allocation43_spill] sm:$0xff] %v6129_v14  ;;  %v4336_v10 = vpop.f32.mrf.mxu0  ;;  %v2440_v57 = vadd.f32 %v6010_v46, %v2172_v44 }
 0x1c2   : > { %v4286_v41 = vpop.f32.mrf.mxu1 }
 0x1c3   : > { %v2711_v63 = vadd.f32 %v4286_v41, %v2439_v15  ;;  %v2822_v45 = vpop.f32.mrf.mxu0 }
 0x1c4   : > { %v2551_v31 = vpop.f32.mrf.mxu1 }
 0x1c5   : > { %v2982_v19 = vadd.f32 %v4336_v10, %v2711_v63  ;;  %v2710_v1 = vadd.f32 %v2551_v31, %v2438_v29  ;;  %v4339_v14 = vpop.f32.mrf.mxu0 }
 0x1c6   : > { %v4289_v54 = vpop.f32.mrf.mxu1 }
 0x1c7   : > { %3014 = vst [vmem:[%s6144_s10 + $0x8] sm:$0xff] %v2982_v19  ;;  %v2981_v7 = vadd.f32 %v2822_v45, %v2710_v1  ;;  %v2713_v15 = vadd.f32 %v4289_v54, %v2441_v5  ;;  %v2832_v56 = vpop.f32.mrf.mxu0  ;;  %v3084_v63 = vmul.f32 %v2982_v19, %v2982_v19  ;;  %v2176_v45 = vadd.f32 %v6028_v0, %v5928_v4 }
 0x1c8   : > { %v2561_v29 = vpop.f32.mrf.mxu1  ;;  %v2445_v0 = vadd.f32 %v6022_v38, %v2177_v30 }
 0x1c9   : > { %3013 = vst [vmem:[%s6144_s10] sm:$0xff] %v2981_v7  ;;  %v3045_v28 = vadd.f32 %v2982_v19, %v2981_v7  ;;  %v3083_v44 = vmul.f32 %v2981_v7, %v2981_v7  ;;  %v2984_v39 = vadd.f32 %v4339_v14, %v2713_v15  ;;  %v2712_v46 = vadd.f32 %v2561_v29, %v2440_v57  ;;  %v4342_v18 = vpop.f32.mrf.mxu0 }
 0x1ca   : > { %v4292_v5 = vpop.f32.mrf.mxu1  ;;  %v2179_v14 = vadd.f32 %v6032_v26, %v5931_v48  ;;  %v2444_v24 = vadd.f32 %v6026_v34, %v2176_v45  ;;  %v2178_v26 = vadd.f32 %v6036_v27, %v5934_v32 }
 0x1cb   : > { %v3115_v62 = vadd.f32 %v3084_v63, %v3083_v44  ;;  %3016 = vst [vmem:[%s6144_s10 + $0x18] sm:$0xff] %v2984_v39  ;;  %v2983_v55 = vadd.f32 %v2832_v56, %v2712_v46  ;;  %v2715_v10 = vadd.f32 %v4292_v5, %v2443_v13  ;;  %v2842_v41 = vpop.f32.mrf.mxu0  ;;  %v3086_v54 = vmul.f32 %v2984_v39, %v2984_v39 }
 0x1cc   : > { %v2571_v59 = vpop.f32.mrf.mxu1  ;;  %v2447_v48 = vadd.f32 %v6030_v49, %v2179_v14  ;;  %v2181_v56 = vadd.f32 %v6040_v33, %v5937_v40  ;;  %v2446_v45 = vadd.f32 %v6034_v47, %v2178_v26 }
 0x1cd   : > { %3015 = vst [vmem:[%s6144_s10 + $0x10] sm:$0xff] %v2983_v55  ;;  %v3046_v31 = vadd.f32 %v3045_v28, %v2983_v55  ;;  %v3085_v19 = vmul.f32 %v2983_v55, %v2983_v55  ;;  %v2986_v53 = vadd.f32 %v4342_v18, %v2715_v10  ;;  %v2714_v20 = vadd.f32 %v2571_v59, %v2442_v43  ;;  %v4345_v4 = vpop.f32.mrf.mxu0 }
 0x1ce   : > { %v4295_v1 = vpop.f32.mrf.mxu1  ;;  %v2449_v5 = vadd.f32 %v6038_v9, %v2181_v56  ;;  %v2183_v43 = vadd.f32 %v6048_v17, %v5943_v50  ;;  %v2182_v59 = vadd.f32 %v6052_v22, %v5946_v52 }
 0x1cf   : > { %v3116_v57 = vadd.f32 %v3115_v62, %v3085_v19  ;;  %3018 = vst [vmem:[%s6144_s10 + $0x28] sm:$0xff] %v2986_v53  ;;  %v2985_v21 = vadd.f32 %v2842_v41, %v2714_v20  ;;  %v3047_v7 = vadd.f32 %v3046_v31, %v2984_v39  ;;  %v2852_v15 = vpop.f32.mrf.mxu0  ;;  %v2717_v13 = vadd.f32 %v4295_v1, %v2445_v0 }
 0x1d0   : > { %v2581_v63 = vpop.f32.mrf.mxu1  ;;  %v2180_v39 = vadd.f32 %v6044_v42, %v5940_v23  ;;  %v3088_v49 = vmul.f32 %v2986_v53, %v2986_v53  ;;  %v2451_v20 = vadd.f32 %v6046_v36, %v2183_v43 }
 0x1d1   : > { %3017 = vst [vmem:[%s6144_s10 + $0x20] sm:$0xff] %v2985_v21  ;;  %v3048_v38 = vadd.f32 %v3047_v7, %v2985_v21  ;;  %v3087_v34 = vmul.f32 %v2985_v21, %v2985_v21  ;;  %v3117_v29 = vadd.f32 %v3116_v57, %v3086_v54  ;;  %v2716_v28 = vadd.f32 %v2581_v63, %v2444_v24  ;;  %v4348_v44 = vpop.f32.mrf.mxu0 }
 0x1d2   : > { %v2988_v46 = vadd.f32 %v4345_v4, %v2717_v13  ;;  %v4298_v18 = vpop.f32.mrf.mxu1  ;;  %v2448_v14 = vadd.f32 %v6042_v12, %v2180_v39  ;;  %v2185_v12 = vadd.f32 %v6056_v8, %v5949_v6  ;;  %v2450_v7 = vadd.f32 %v6050_v3, %v2182_v59 }
 0x1d3   : > { %v3118_v32 = vadd.f32 %v3117_v29, %v3087_v34  ;;  %v2987_v27 = vadd.f32 %v2852_v15, %v2716_v28  ;;  %v3049_v30 = vadd.f32 %v3048_v38, %v2986_v53  ;;  %v2719_v40 = vadd.f32 %v4298_v18, %v2447_v48  ;;  %v2862_v33 = vpop.f32.mrf.mxu0 }
 0x1d4   : > { %3020 = vst [vmem:[%s6144_s10 + $0x38] sm:$0xff] %v2988_v46  ;;  %v2591_v62 = vpop.f32.mrf.mxu1  ;;  %v3090_v31 = vmul.f32 %v2988_v46, %v2988_v46  ;;  %v2184_v15 = vadd.f32 %v6060_v61, %v5952_v16  ;;  %v2187_v6 = vadd.f32 %v6064_v51, %v5955_v25  ;;  %v2453_v38 = vadd.f32 %v6054_v37, %v2185_v12 }
 0x1d5   : > { %3019 = vst [vmem:[%s6144_s10 + $0x30] sm:$0xff] %v2987_v27  ;;  %v3050_v23 = vadd.f32 %v3049_v30, %v2987_v27  ;;  %v3089_v42 = vmul.f32 %v2987_v27, %v2987_v27  ;;  %v3119_v55 = vadd.f32 %v3118_v32, %v3088_v49  ;;  %v2990_v10 = vadd.f32 %v4348_v44, %v2719_v40  ;;  %v4351_v41 = vpop.f32.mrf.mxu0  ;;  %v6634_v40 = vld [vmem:[#allocation45_spill] sm:$0xff] }
 0x1d6   : > { %v2718_v47 = vadd.f32 %v2591_v62, %v2446_v45  ;;  %v4301_v9 = vpop.f32.mrf.mxu1  ;;  %v2452_v39 = vadd.f32 %v6058_v58, %v2184_v15  ;;  %v2186_v25 = vadd.f32 %v6068_v35, %v5958_v11  ;;  %v2455_v37 = vadd.f32 %v6062_v60, %v2187_v6  ;;  %v6637_v60 = vld [vmem:[#allocation46_spill] sm:$0xff]  ;;  %v6643_v15 = vld [vmem:[#allocation48_spill] sm:$0xff] }
 0x1d7   : > { %v3120_v19 = vadd.f32 %v3119_v55, %v3089_v42  ;;  %3022 = vst [vmem:[%s6144_s10 + $0x48] sm:$0xff] %v2990_v10  ;;  %v3051_v50 = vadd.f32 %v3050_v23, %v2988_v46  ;;  %v2721_v17 = vadd.f32 %v4301_v9, %v2449_v5  ;;  %v2872_v53 = vpop.f32.mrf.mxu0  ;;  %v3092_v8 = vmul.f32 %v2990_v10, %v2990_v10  ;;  %v6636_v42 = vld [vmem:[#allocation9_spill] sm:$0xff]  ;;  %v6639_v9 = vld [vmem:[#allocation47_spill] sm:$0xff] }
 0x1d8   : > { %v2989_v4 = vadd.f32 %v2862_v33, %v2718_v47  ;;  %v2601_v0 = vpop.f32.mrf.mxu1  ;;  %v6635_v33 = vld [vmem:[#allocation12_spill] sm:$0xff]  ;;  %v2454_v55 = vadd.f32 %v6636_v42, %v2186_v25  ;;  %v6653_v42 = vld [vmem:[#allocation27_spill] sm:$0xff] }
 0x1d9   : > { %v3121_v24 = vadd.f32 %v3120_v19, %v3090_v31  ;;  %v2992_v1 = vadd.f32 %v4351_v41, %v2721_v17  ;;  %v2720_v52 = vadd.f32 %v2601_v0, %v2448_v14  ;;  %v4354_v22 = vpop.f32.mrf.mxu0  ;;  %v2189_v45 = vadd.f32 %v6635_v33, %v6634_v40  ;;  %v6640_v31 = vld [vmem:[#allocation20_spill] sm:$0xff] }
 0x1da   : > { %3021 = vst [vmem:[%s6144_s10 + $0x40] sm:$0xff] %v2989_v4  ;;  %v3052_v54 = vadd.f32 %v3051_v50, %v2989_v4  ;;  %v3091_v57 = vmul.f32 %v2989_v4, %v2989_v4  ;;  %v4304_v21 = vpop.f32.mrf.mxu1  ;;  %v2191_v19 = vadd.f32 %v6640_v31, %v6639_v9  ;;  %v6641_v4 = vld [vmem:[#allocation10_spill] sm:$0xff]  ;;  %v6654_v31 = vld [vmem:[#allocation32_spill] sm:$0xff] }
 0x1db   : > { %3024 = vst [vmem:[%s6144_s10 + $0x58] sm:$0xff] %v2992_v1  ;;  %v2991_v36 = vadd.f32 %v2872_v53, %v2720_v52  ;;  %v2723_v48 = vadd.f32 %v4304_v21, %v2451_v20  ;;  %v2882_v26 = vpop.f32.mrf.mxu0  ;;  %v3094_v18 = vmul.f32 %v2992_v1, %v2992_v1  ;;  %v2457_v0 = vadd.f32 %v6641_v4, %v2189_v45  ;;  %v6642_v21 = vld [vmem:[#allocation14_spill] sm:$0xff] }
 0x1dc   : > { %v3122_v56 = vadd.f32 %v3121_v24, %v3091_v57  ;;  %v3053_v13 = vadd.f32 %v3052_v54, %v2990_v10  ;;  %v2611_v63 = vpop.f32.mrf.mxu1  ;;  %v6638_v10 = vld [vmem:[#allocation16_spill] sm:$0xff] }
 0x1dd   : > { %3023 = vst [vmem:[%s6144_s10 + $0x50] sm:$0xff] %v2991_v36  ;;  %v3093_v34 = vmul.f32 %v2991_v36, %v2991_v36  ;;  %v2994_v3 = vadd.f32 %v4354_v22, %v2723_v48  ;;  %v2722_v29 = vadd.f32 %v2611_v63, %v2450_v7  ;;  %v4357_v28 = vpop.f32.mrf.mxu0  ;;  %v2188_v41 = vadd.f32 %v6638_v10, %v6637_v60 }
 0x1de   : > { %v3054_v16 = vadd.f32 %v3053_v13, %v2991_v36  ;;  %v3123_v61 = vadd.f32 %v3122_v56, %v3092_v8  ;;  %v4307_v44 = vpop.f32.mrf.mxu1  ;;  %v6644_v36 = vld [vmem:[#allocation24_spill] sm:$0xff]  ;;  %v6645_v56 = vld [vmem:[#allocation18_spill] sm:$0xff] }
 0x1df   : > { %3026 = vst [vmem:[%s6144_s10 + $0x68] sm:$0xff] %v2994_v3  ;;  %v2993_v51 = vadd.f32 %v2882_v26, %v2722_v29  ;;  %v2725_v49 = vadd.f32 %v4307_v44, %v2453_v38  ;;  %v2892_v46 = vpop.f32.mrf.mxu0  ;;  %v3096_v50 = vmul.f32 %v2994_v3, %v2994_v3  ;;  %v2456_v7 = vadd.f32 %v6642_v21, %v2188_v41  ;;  %v6646_v29 = vld [vmem:[#allocation49_spill] sm:$0xff] }
 0x1e0   : > { %v3124_v32 = vadd.f32 %v3123_v61, %v3093_v34  ;;  %v3055_v27 = vadd.f32 %v3054_v16, %v2992_v1  ;;  %v2621_v30 = vpop.f32.mrf.mxu1  ;;  %v2190_v48 = vadd.f32 %v6644_v36, %v6643_v15  ;;  %v2459_v13 = vadd.f32 %v6645_v56, %v2191_v19  ;;  %v6659_v56 = vld [vmem:[#allocation38_spill] sm:$0xff] }
 0x1e1   : > { %3025 = vst [vmem:[%s6144_s10 + $0x60] sm:$0xff] %v2993_v51  ;;  %v3095_v5 = vmul.f32 %v2993_v51, %v2993_v51  ;;  %v2996_v58 = vadd.f32 %v4357_v28, %v2725_v49  ;;  %v2724_v43 = vadd.f32 %v2621_v30, %v2452_v39  ;;  %v4360_v62 = vpop.f32.mrf.mxu0  ;;  %v6647_v28 = vld [vmem:[#allocation29_spill] sm:$0xff] }
 0x1e2   : > { %v3056_v11 = vadd.f32 %v3055_v27, %v2993_v51  ;;  %v3125_v35 = vadd.f32 %v3124_v32, %v3094_v18  ;;  %v4310_v23 = vpop.f32.mrf.mxu1  ;;  %v2193_v16 = vadd.f32 %v6647_v28, %v6646_v29  ;;  %v6649_v32 = vld [vmem:[#allocation50_spill] sm:$0xff] }
 0x1e3   : > { %3028 = vst [vmem:[%s6144_s10 + $0x78] sm:$0xff] %v2996_v58  ;;  %v2995_v14 = vadd.f32 %v2892_v46, %v2724_v43  ;;  %v2727_v59 = vadd.f32 %v4310_v23, %v2455_v37  ;;  %v2902_v47 = vpop.f32.mrf.mxu0  ;;  %v3098_v63 = vmul.f32 %v2996_v58, %v2996_v58  ;;  %v6648_v37 = vld [vmem:[#allocation22_spill] sm:$0xff] }
 0x1e4   : > { %v3126_v17 = vadd.f32 %v3125_v35, %v3095_v5  ;;  %v3057_v53 = vadd.f32 %v3056_v11, %v2994_v3  ;;  %v2631_v20 = vpop.f32.mrf.mxu1  ;;  %v2458_v18 = vadd.f32 %v6648_v37, %v2190_v48  ;;  %v6650_v27 = vld [vmem:[#allocation34_spill] sm:$0xff]  ;;  %v6651_v5 = vld [vmem:[#allocation51_spill] sm:$0xff] }
 0x1e5   : > { %3027 = vst [vmem:[%s6144_s10 + $0x70] sm:$0xff] %v2995_v14  ;;  %v3097_v12 = vmul.f32 %v2995_v14, %v2995_v14  ;;  %v2998_v24 = vadd.f32 %v4360_v62, %v2727_v59  ;;  %v2726_v1 = vadd.f32 %v2631_v20, %v2454_v55  ;;  %v4363_v52 = vpop.f32.mrf.mxu0  ;;  %v2192_v30 = vadd.f32 %v6650_v27, %v6649_v32 }
 0x1e6   : > { %v3058_v22 = vadd.f32 %v3057_v53, %v2995_v14  ;;  %v3127_v54 = vadd.f32 %v3126_v17, %v3096_v50  ;;  %v4313_v57 = vpop.f32.mrf.mxu1  ;;  %v2461_v55 = vadd.f32 %v6653_v42, %v2193_v16  ;;  %v6655_v50 = vld [vmem:[#allocation23_spill] sm:$0xff]  ;;  %v6662_v16 = vld [vmem:[#allocation33_spill] sm:$0xff] }
 0x1e7   : > { %3030 = vst [vmem:[%s6144_s10 + $0x88] sm:$0xff] %v2998_v24  ;;  %v2997_v26 = vadd.f32 %v2902_v47, %v2726_v1  ;;  %v2729_v6 = vadd.f32 %v4313_v57, %v2457_v0  ;;  %v2912_v8 = vpop.f32.mrf.mxu0  ;;  %v3100_v62 = vmul.f32 %v2998_v24, %v2998_v24  ;;  %v2460_v19 = vadd.f32 %v6654_v31, %v2192_v30  ;;  %v6656_v17 = vld [vmem:[#allocation15_spill] sm:$0xff]  ;;  %v6658_v57 = vld [vmem:[#allocation28_spill] sm:$0xff]  ;;  %v6668_v42 = vld [vmem:[#allocation17_spill] sm:$0xff] }
 0x1e8   : > { %v3128_v38 = vadd.f32 %v3127_v54, %v3097_v12  ;;  %v3059_v34 = vadd.f32 %v3058_v22, %v2996_v58  ;;  %v2641_v3 = vpop.f32.mrf.mxu1  ;;  %v6652_v58 = vld [vmem:[#allocation13_spill] sm:$0xff]  ;;  %v2194_v53 = vadd.f32 %v6656_v17, %v6655_v50  ;;  %v6657_v12 = vld [vmem:[#allocation36_spill] sm:$0xff]  ;;  %v2197_v21 = vadd.f32 %v6104_v2, %v6658_v57  ;;  %v6663_v2 = vld [vmem:[#allocation30_spill] sm:$0xff] }
 0x1e9   : > { %3029 = vst [vmem:[%s6144_s10 + $0x80] sm:$0xff] %v2997_v26  ;;  %v3099_v61 = vmul.f32 %v2997_v26, %v2997_v26  ;;  %v3000_v44 = vadd.f32 %v4363_v52, %v2729_v6  ;;  %v2728_v39 = vadd.f32 %v2641_v3, %v2456_v7  ;;  %v4366_v25 = vpop.f32.mrf.mxu0  ;;  %v2195_v43 = vadd.f32 %v6652_v58, %v6651_v5  ;;  %v6666_v58 = vld [vmem:[#allocation35_spill] sm:$0xff] }
 0x1ea   : > { %v3060_v51 = vadd.f32 %v3059_v34, %v2997_v26  ;;  %v3129_v49 = vadd.f32 %v3128_v38, %v3098_v63  ;;  %v4316_v46 = vpop.f32.mrf.mxu1  ;;  %v6660_v63 = vld [vmem:[#allocation31_spill] sm:$0xff]  ;;  %v6661_v38 = vld [vmem:[#allocation21_spill] sm:$0xff] }
 0x1eb   : > { %3032 = vst [vmem:[%s6144_s10 + $0x98] sm:$0xff] %v3000_v44  ;;  %v2999_v40 = vadd.f32 %v2912_v8, %v2728_v39  ;;  %v2731_v33 = vadd.f32 %v4316_v46, %v2459_v13  ;;  %v2922_v45 = vpop.f32.mrf.mxu0  ;;  %v3102_v1 = vmul.f32 %v3000_v44, %v3000_v44  ;;  %v2462_v13 = vadd.f32 %v6659_v56, %v2194_v53 }
 0x1ec   : > { %v3130_v11 = vadd.f32 %v3129_v49, %v3099_v61  ;;  %v3061_v35 = vadd.f32 %v3060_v51, %v2998_v24  ;;  %v2651_v23 = vpop.f32.mrf.mxu1  ;;  %v2463_v24 = vadd.f32 %v6657_v12, %v2195_v43  ;;  %v2196_v34 = vadd.f32 %v6661_v38, %v6660_v63  ;;  %v6664_v49 = vld [vmem:[#allocation25_spill] sm:$0xff] }
 0x1ed   : > { %3031 = vst [vmem:[%s6144_s10 + $0x90] sm:$0xff] %v2999_v40  ;;  %v3101_v60 = vmul.f32 %v2999_v40, %v2999_v40  ;;  %v3002_v10 = vadd.f32 %v4366_v25, %v2731_v33  ;;  %v2730_v41 = vadd.f32 %v2651_v23, %v2458_v18  ;;  %v4369_v14 = vpop.f32.mrf.mxu0  ;;  %v2199_v61 = vadd.f32 %v6663_v2, %v6662_v16  ;;  %v6667_v43 = vld [vmem:[#allocation41_spill] sm:$0xff] }
 0x1ee   : > { %v3062_v59 = vadd.f32 %v3061_v35, %v2999_v40  ;;  %v3131_v47 = vadd.f32 %v3130_v11, %v3100_v62  ;;  %v4319_v9 = vpop.f32.mrf.mxu1  ;;  %v2465_v46 = vadd.f32 %v6664_v49, %v2197_v21  ;;  %v2198_v62 = vadd.f32 %v6667_v43, %v6666_v58 }
 0x1ef   : > { %3034 = vst [vmem:[%s6144_s10 + $0xa8] sm:$0xff] %v3002_v10  ;;  %v3001_v20 = vadd.f32 %v2922_v45, %v2730_v41  ;;  %v2733_v4 = vadd.f32 %v4319_v9, %v2461_v55  ;;  %v2932_v0 = vpop.f32.mrf.mxu0  ;;  %v6665_v45 = vld [vmem:[#allocation40_spill] sm:$0xff]  ;;  %v2467_v55 = vadd.f32 %v6668_v42, %v2199_v61 }
 0x1f0   : > { %v3132_v52 = vadd.f32 %v3131_v47, %v3101_v60  ;;  %v3063_v22 = vadd.f32 %v3062_v59, %v3000_v44  ;;  %v2661_v54 = vpop.f32.mrf.mxu1  ;;  %v3104_v44 = vmul.f32 %v3002_v10, %v3002_v10  ;;  %v2464_v5 = vadd.f32 %v6665_v45, %v2196_v34  ;;  %v6669_v59 = vld [vmem:[#allocation37_spill] sm:$0xff]  ;;  %v6670_v47 = vld [vmem:[#allocation26_spill] sm:$0xff] }
 0x1f1   : > { %3033 = vst [vmem:[%s6144_s10 + $0xa0] sm:$0xff] %v3001_v20  ;;  %v3103_v7 = vmul.f32 %v3001_v20, %v3001_v20  ;;  %v3004_v15 = vadd.f32 %v4369_v14, %v2733_v4  ;;  %v2732_v36 = vadd.f32 %v2661_v54, %v2460_v19  ;;  %v4372_v48 = vpop.f32.mrf.mxu0  ;;  %v2201_v9 = vadd.f32 %v6670_v47, %v6669_v59 }
 0x1f2   : > { %v3064_v26 = vadd.f32 %v3063_v22, %v3001_v20  ;;  %v3133_v6 = vadd.f32 %v3132_v52, %v3102_v1  ;;  %v4322_v8 = vpop.f32.mrf.mxu1  ;;  %v6673_v1 = vld [vmem:[#allocation43_spill] sm:$0xff] }
 0x1f3   : > { %3036 = vst [vmem:[%s6144_s10 + $0xb8] sm:$0xff] %v3004_v15  ;;  %v3003_v3 = vadd.f32 %v2932_v0, %v2732_v36  ;;  %v2735_v29 = vadd.f32 %v4322_v8, %v2463_v24  ;;  %v2942_v28 = vpop.f32.mrf.mxu0  ;;  %v3106_v60 = vmul.f32 %v3004_v15, %v3004_v15  ;;  %v6671_v0 = vld [vmem:[#allocation19_spill] sm:$0xff] }
 0x1f4   : > { %v3134_v39 = vadd.f32 %v3133_v6, %v3103_v7  ;;  %v3065_v25 = vadd.f32 %v3064_v26, %v3002_v10  ;;  %v2671_v51 = vpop.f32.mrf.mxu1  ;;  %v2466_v12 = vadd.f32 %v6671_v0, %v2198_v62  ;;  %v6672_v24 = vld [vmem:[#allocation39_spill] sm:$0xff] }
 0x1f5   : > { %3035 = vst [vmem:[%s6144_s10 + $0xb0] sm:$0xff] %v3003_v3  ;;  %v3105_v37 = vmul.f32 %v3003_v3, %v3003_v3  ;;  %v3006_v18 = vadd.f32 %v4372_v48, %v2735_v29  ;;  %v2734_v32 = vadd.f32 %v2671_v51, %v2462_v13  ;;  %v4375_v27 = vpop.f32.mrf.mxu0  ;;  %v2200_v52 = vadd.f32 %v6673_v1, %v6672_v24  ;;  %v6674_v48 = vld [vmem:[#allocation11_spill] sm:$0xff] }
 0x1f6   : > { %v3066_v30 = vadd.f32 %v3065_v25, %v3003_v3  ;;  %v3135_v40 = vadd.f32 %v3134_v39, %v3104_v44  ;;  %v4325_v33 = vpop.f32.mrf.mxu1  ;;  %v2469_v26 = vadd.f32 %v6674_v48, %v2201_v9  ;;  %v6675_v3 = vld [vmem:[#allocation42_spill] sm:$0xff] }
 0x1f7   : > { %3038 = vst [vmem:[%s6144_s10 + $0xc8] sm:$0xff] %v3006_v18  ;;  %v3005_v11 = vadd.f32 %v2942_v28, %v2734_v32  ;;  %v2737_v35 = vadd.f32 %v4325_v33, %v2465_v46  ;;  %v2952_v23 = vpop.f32.mrf.mxu0  ;;  %v3108_v21 = vmul.f32 %v3006_v18, %v3006_v18  ;;  %v2468_v29 = vadd.f32 %v6675_v3, %v2200_v52 }
 0x1f8   : > { %v3136_v10 = vadd.f32 %v3135_v40, %v3105_v37  ;;  %v3067_v41 = vadd.f32 %v3066_v30, %v3004_v15  ;;  %v2681_v14 = vpop.f32.mrf.mxu1 }
 0x1f9   : > { %3037 = vst [vmem:[%s6144_s10 + $0xc0] sm:$0xff] %v3005_v11  ;;  %v3107_v31 = vmul.f32 %v3005_v11, %v3005_v11  ;;  %v3008_v19 = vadd.f32 %v4375_v27, %v2737_v35  ;;  %v2736_v50 = vadd.f32 %v2681_v14, %v2464_v5  ;;  %v4378_v17 = vpop.f32.mrf.mxu0 }
 0x1fa   : > { %v3068_v53 = vadd.f32 %v3067_v41, %v3005_v11  ;;  %v3137_v20 = vadd.f32 %v3136_v10, %v3106_v60  ;;  %v4328_v4 = vpop.f32.mrf.mxu1 }
 0x1fb   : > { %3040 = vst [vmem:[%s6144_s10 + $0xd8] sm:$0xff] %v3008_v19  ;;  %v3007_v22 = vadd.f32 %v2952_v23, %v2736_v50  ;;  %v2739_v54 = vadd.f32 %v4328_v4, %v2467_v55  ;;  %v2962_v57 = vpop.f32.mrf.mxu0  ;;  %v3110_v2 = vmul.f32 %v3008_v19, %v3008_v19 }
 0x1fc   : > { %v3138_v7 = vadd.f32 %v3137_v20, %v3107_v31  ;;  %v3069_v15 = vadd.f32 %v3068_v53, %v3006_v18  ;;  %v2691_v36 = vpop.f32.mrf.mxu1 }
 0x1fd   : > { %3039 = vst [vmem:[%s6144_s10 + $0xd0] sm:$0xff] %v3007_v22  ;;  %v3109_v6 = vmul.f32 %v3007_v22, %v3007_v22  ;;  %v3010_v8 = vadd.f32 %v4378_v17, %v2739_v54  ;;  %v2738_v56 = vadd.f32 %v2691_v36, %v2466_v12  ;;  %v4381_v34 = vpop.f32.mrf.mxu0 }
 0x1fe   : > { %v3070_v13 = vadd.f32 %v3069_v15, %v3007_v22  ;;  %v3139_v63 = vadd.f32 %v3138_v7, %v3108_v21  ;;  %v4331_v38 = vpop.f32.mrf.mxu1 }
 0x1ff   : > { %3042 = vst [vmem:[%s6144_s10 + $0xe8] sm:$0xff] %v3010_v8  ;;  %v3009_v28 = vadd.f32 %v2962_v57, %v2738_v56  ;;  %v2741_v16 = vadd.f32 %v4331_v38, %v2469_v26  ;;  %v2972_v18 = vpop.f32.mrf.mxu0  ;;  %v3112_v27 = vmul.f32 %v3010_v8, %v3010_v8 }
 0x200   : > { %v3140_v61 = vadd.f32 %v3139_v63, %v3109_v6  ;;  %v3071_v44 = vadd.f32 %v3070_v13, %v3008_v19  ;;  %v2701_v39 = vpop.f32.mrf.mxu1 }
 0x201   : > { %3041 = vst [vmem:[%s6144_s10 + $0xe0] sm:$0xff] %v3009_v28  ;;  %v3111_v25 = vmul.f32 %v3009_v28, %v3009_v28  ;;  %v3012_v51 = vadd.f32 %v4381_v34, %v2741_v16  ;;  %v2740_v49 = vadd.f32 %v2701_v39, %v2468_v29 }
 0x202   : > { %v3072_v46 = vadd.f32 %v3071_v44, %v3009_v28  ;;  %v3141_v37 = vadd.f32 %v3140_v61, %v3110_v2 }
 0x203   : > { %3044 = vst [vmem:[%s6144_s10 + $0xf8] sm:$0xff] %v3012_v51  ;;  %v3011_v32 = vadd.f32 %v2972_v18, %v2740_v49 }
 0x204   : > { %v3142_v30 = vadd.f32 %v3141_v37, %v3111_v25  ;;  %v3073_v40 = vadd.f32 %v3072_v46, %v3010_v8 }
 0x205   : > { %3043 = vst [vmem:[%s6144_s10 + $0xf0] sm:$0xff] %v3011_v32  ;;  %v3113_v33 = vmul.f32 %v3011_v32, %v3011_v32 }
 0x206   : > { %v3074_v45 = vadd.f32 %v3073_v40, %v3011_v32  ;;  %v3143_v5 = vadd.f32 %v3142_v30, %v3112_v27 }
 0x207   : > { %4449 = shalt.err (!%p4446_p3)
}
 0x208   : > { %s4450_s5 = scalar_lea.hbm %s6261_s22, 4096  ;;  %s4454_s9 = scalar_lea.hbm %s6377_s2, 8192 }
 0x209   : > { %p4451_p4 = scmp.ne.s32.totalorder %s6261_s22, %s4450_s5  ;;  %p4455_p9 = scmp.lt.s32.totalorder %s6261_s22, %s6377_s2 }
 0x20a   : > { %p4456_p10 = scmp.lt.s32.totalorder %s4454_s9, %s4450_s5 }
 0x20b   : > { %p4452_p7 = pnand %p4451_p4, %p4624_p5 }
 0x20c   : > { %p4457_p11 = por %p4456_p10, %p4455_p9 }
 0x20d   : > { %p4453_p8 = pneg %p4452_p7 }
 0x20f   : > { %p4458_p12 = pnand %p4457_p11, %p4453_p8 }
 0x211   : > { %4461 = shalt.err (!%p4458_p12)
}
 0x212   : > { %s4555_s13 = smov 128   ;;  %s4556_s14 = smov 8   ;;  %v3114_v58 = vmul.f32 %v3012_v51, %v3012_v51  ;;  %v3075_v43 = vadd.f32 %v3074_v45, %v3012_v51  ;;  %v3144_v62 = vadd.f32 %v3143_v5, %v3113_v33 }
 0x213   : > { %4385 = dma.vmem_to_hbm [thread:$0]  (%p4624_p5), %s6263_s12, 4096, %s6261_s22, %s3154_s23, %s4555_s13, %s4555_s13, %s4556_s14  }
 0x214   : > { %v3076_v11 = vrot.slane %v3075_v43, 4  ;;  %v3145_v35 = vadd.f32 %v3144_v62, %v3114_v58  ;;  %s3158_s27 = sand.u32 1, %s4605_s19   ;;  %s3630_s28 = sshll.u32 %s4605_s19, 4 }
 0x215   : > { %s200_s29 = scalar_lea.vmem [#allocation4], %s6124_s8  ;;  %s206_s12 = scalar_lea.vmem [#allocation6], %s6124_s8 }
 0x216   : > { %v3077_v23 = vadd.f32 %v3076_v11, %v3075_v43  ;;  %v3146_v42 = vrot.slane %v3145_v35, 4  ;;  %s3191_s30 = sshll.u32 %s200_s29, 4  ;;  %s3204_s22 = sshll.u32 %s206_s12, 4  ;;  %s6301_s30 = int_to_ptr.vmem [resolvable:$true] %s3191_s30  ;;  %s6308_s22 = int_to_ptr.vmem [resolvable:$true] %s3204_s22 }
 0x217   : > { %s6299_s6 = scalar_lea.hbm %s6378_s3, %s3630_s28  ;;  %s6306_s9 = scalar_lea.hbm %s6379_s4, %s3630_s28 }
 0x218   : > { %v3147_v55 = vadd.f32 %v3146_v42, %v3145_v35  ;;  %v3078_v60 = vrot.slane %v3077_v23, 2  ;;  %s6310_s10 = scalar_lea.sflag [#allocation5], %s3158_s27  ;;  %s4462_s11 = scalar_lea.vmem %s6301_s30, 16 }
 0x219   : > { %p4463_p13 = scmp.ne.s32.totalorder %s6301_s30, %s4462_s11  ;;  %s4557_s13 = smov [#allocation4]  }
 0x21a   : > { %v3079_v10 = vadd.f32 %v3078_v60, %v3077_v23  ;;  %v3148_v41 = vrot.slane %v3147_v55, 2  ;;  %s4466_s14 = sshll.u32 %s4557_s13, 4  ;;  %s4467_s14 = int_to_ptr.vmem [resolvable:$false] %s4466_s14 }
 0x21b   : > { %p4464_p0 = pnand %p4463_p13, %p4624_p5  ;;  %s4468_s23 = scalar_lea.vmem %s4467_s14, 32 }
 0x21c   : > { %v3080_v14 = vrot.slane %v3079_v10, 1  ;;  %v3149_v59 = vadd.f32 %v3148_v41, %v3147_v55  ;;  %p4469_p2 = scmp.lt.s32.totalorder %s6301_s30, %s4467_s14  ;;  %p4470_p3 = scmp.lt.s32.totalorder %s4468_s23, %s4462_s11 }
 0x21d   : > { %p4465_p1 = pneg %p4464_p0 }
 0x21e   : > { %v3081_v47 = vadd.f32 %v3080_v14, %v3079_v10  ;;  %v3150_v9 = vrot.slane %v3149_v59, 1  ;;  %p4471_p4 = por %p4470_p3, %p4469_p2 }
 0x220   : > { %3082 = vst [vmem:[%s200_s29] sm:$0x1] %v3081_v47  ;;  %v3151_v31 = vadd.f32 %v3150_v9, %v3149_v59  ;;  %p4472_p7 = pnand %p4471_p4, %p4465_p1 }
 0x222   : > { %4475 = shalt.err (!%p4472_p7)
}
 0x223   : > { %s4476_s27 = scalar_lea.hbm %s6299_s6, 16  ;;  %s4480_s5 = scalar_lea.hbm %s6378_s3, 32 }
 0x224   : > { %p4477_p8 = scmp.ne.s32.totalorder %s6299_s6, %s4476_s27  ;;  %p4481_p11 = scmp.lt.s32.totalorder %s6299_s6, %s6378_s3 }
 0x225   : > { %p4482_p12 = scmp.lt.s32.totalorder %s4480_s5, %s4476_s27 }
 0x226   : > { %p4478_p9 = pnand %p4477_p8, %p4624_p5 }
 0x227   : > { %p4483_p13 = por %p4482_p12, %p4481_p11 }
 0x228   : > { %p4479_p10 = pneg %p4478_p9 }
 0x22a   : > { %p4484_p0 = pnand %p4483_p13, %p4479_p10 }
 0x22c   : > { %4487 = shalt.err (!%p4484_p0)
}
 0x22d   : > { %4386 = dma.vmem_to_hbm [thread:$0]  (%p4624_p5), %s6301_s30, 16, %s6299_s6, %s6310_s10   ;;  %3152 = vst [vmem:[%s206_s12] sm:$0x1] %v3151_v31 }
 0x22e   : > { %s4488_s11 = scalar_lea.vmem %s6308_s22, 16  ;;  %s4558_s13 = smov [#allocation6]  }
 0x22f   : > { %p4489_p1 = scmp.ne.s32.totalorder %s6308_s22, %s4488_s11  ;;  %s4492_s14 = sshll.u32 %s4558_s13, 4  ;;  %s4493_s14 = int_to_ptr.vmem [resolvable:$false] %s4492_s14 }
 0x230   : > { %s4494_s23 = scalar_lea.vmem %s4493_s14, 32  ;;  %p4495_p4 = scmp.lt.s32.totalorder %s6308_s22, %s4493_s14 }
 0x231   : > { %p4490_p2 = pnand %p4489_p1, %p4624_p5  ;;  %p4496_p7 = scmp.lt.s32.totalorder %s4494_s23, %s4488_s11 }
 0x233   : > { %p4491_p3 = pneg %p4490_p2  ;;  %p4497_p8 = por %p4496_p7, %p4495_p4 }
 0x235   : > { %p4498_p9 = pnand %p4497_p8, %p4491_p3 }
 0x237   : > { %4501 = shalt.err (!%p4498_p9)
}
 0x238   : > { %s4502_s8 = scalar_lea.hbm %s6306_s9, 16  ;;  %s4506_s6 = scalar_lea.hbm %s6379_s4, 32 }
 0x239   : > { %p4503_p10 = scmp.ne.s32.totalorder %s6306_s9, %s4502_s8  ;;  %p4507_p13 = scmp.lt.s32.totalorder %s6306_s9, %s6379_s4 }
 0x23a   : > { %p4508_p0 = scmp.lt.s32.totalorder %s4506_s6, %s4502_s8 }
 0x23b   : > { %p4504_p11 = pnand %p4503_p10, %p4624_p5 }
 0x23c   : > { %p4509_p1 = por %p4508_p0, %p4507_p13 }
 0x23d   : > { %p4505_p12 = pneg %p4504_p11 }
 0x23f   : > { %p4510_p2 = pnand %p4509_p1, %p4505_p12 }
 0x241   : > { %4513 = shalt.err (!%p4510_p2)
}
 0x242   : > { %4387 = dma.vmem_to_hbm [thread:$0]  (%p4624_p5), %s6308_s22, 16, %s6306_s9, %s6310_s10  }
 0x243 PF: > { %p4401_p3 = scmp.ge.s32.totalorder %s4552_s18, 2  ;;  %s3216_s29 = sand.u32 1, %s4540_s15  }
 0x244   : > { %s3217_s5 = scalar_lea.sflag [#allocation3], %s3216_s29 }
 0x245   : > { %p4392_p4 = pnand %p4401_p3, %p4628_p6 }
 0x247   : > { %p4393_p7 = pneg %p4392_p4 }
 0x249   : > { %4531 = dma.done.wait (%p4393_p7), %s3217_s5, 4096  }
 0x24a   : > { %4533 = vsyncadd (%p4393_p7), %s3217_s5, 4294963200  ;;  %s3225_s19 = sand.u32 1, %s3316_s20  }
 0x24b   : > { %s3226_s25 = scalar_lea.sflag [#allocation5], %s3225_s19 }
 0x24c   : > { %4535 = dma.done.wait (%p4393_p7), %s3226_s25, 32  }
 0x24d   : > { %4537 = vsyncadd (%p4393_p7), %s3226_s25, 4294967264  ;;  %p18_p5 = scmp.ge.s32.totalorder %s4609_s21, 4   ;;  %s6676_s15 = smov %s4544_s16 }
 0x24e   : > { %s6677_s16 = smov %s4548_s17  ;;  %s6678_s17 = smov %s4622_s24 }
 0x24f   : > { %s6679_s18 = smov %s4609_s21  ;;  %20 = sbr.rel (!%p18_p5) target bundleno = 5 (0x5), region = 103 }
 0x254   :  { %3238 = vsyncpa [#allocation3], 1 }
 0x255   :  { %3240 = vsyncpa [#allocation3 + $0x1], 1 }
 0x256   :  { %3241 = vsyncpa [#allocation5], 1 }
 0x257   :  { %3243 = vsyncpa [#allocation5 + $0x1], 1 }

</bundles_post_ra>
